<compile_context>
chip_gen: v7x
topology: tpu7x:2x2x1
jax: 0.10.0
libtpu: 0.0.40
codegen_flags: <defaults>
</compile_context>

<pallas_src>
import functools

import jax
import jax.numpy as jnp
from jax import lax
from jax.experimental import pallas as pl
from jax.experimental.pallas import tpu as pltpu


# ----------------------------------------------------------------------------
# Pallas kernel: channel mean/max -> pad -> KxK conv (2->1, no bias) -> sigmoid
# ----------------------------------------------------------------------------
def _spatial_attention_kernel(x_ref, w_ref, o_ref, buf_ref, *, C, H, W, K):
    """x_ref: (1, C, H, W) VMEM tile (one batch element)
       w_ref: (2*K*K,) f32 in SMEM, order [channel, kh, kw]
       o_ref: (1, 1, H, W) VMEM output tile
       buf_ref: (2, H+2P, W+2P) f32 VMEM scratch (zero-padded pooled maps)."""
    P = K // 2

    # ---- channel pooling (mean & max): elementwise combines over C slices (VPU) ----
    s = x_ref[0, 0]
    m = x_ref[0, 0]
    for c in range(1, C):
        xc = x_ref[0, c]
        s = s + xc
        m = jnp.maximum(m, xc)
    avg = s * (1.0 / C)

    # ---- stage pooled maps into the zero-padded scratch -----------------------------
    # Scratch is tiny (2*(H+2P)*(W+2P) f32, ~4 KiB here) and per-grid-step, so the full
    # zero-fill is cheap and remains correct when the batch grid axis is core-sharded.
    buf_ref[...] = jnp.zeros_like(buf_ref)
    buf_ref[0, P:P + H, P:P + W] = avg
    buf_ref[1, P:P + H, P:P + W] = m

    # ---- KxK conv (2 -> 1 channel, no bias) as 2*K*K shifted multiply-accumulates ---
    # Weights are SMEM scalars; with a single output channel this is pure VPU work,
    # so no MXU / im2col path is used.
    acc = jnp.zeros((H, W), jnp.float32)
    for c in range(2):
        for kh in range(K):
            for kw in range(K):
                wgt = w_ref[c * K * K + kh * K + kw]
                acc = acc + wgt * buf_ref[c, kh:kh + H, kw:kw + W]

    # ---- sigmoid --------------------------------------------------------------------
    o_ref[0, 0] = (1.0 / (1.0 + jnp.exp(-acc))).astype(o_ref.dtype)


# ----------------------------------------------------------------------------
# Wrapper
# ----------------------------------------------------------------------------
def spatial_attention_pallas(x, weight, kernel_size=7):
    """x: (N, C, H, W) f32.  weight: (1, 2, K, K) f32 (PyTorch conv1 weight, no bias).
       Returns (N, 1, H, W) f32 = sigmoid(conv([mean_c(x), max_c(x)]))."""
    assert kernel_size in (3, 7), "kernel size must be 3 or 7"
    N, C, H, W = x.shape
    K = kernel_size
    P = K // 2
    w_flat = weight.astype(jnp.float32).reshape(-1)          # (2*K*K,), [c, kh, kw]

    kernel = functools.partial(_spatial_attention_kernel, C=C, H=H, W=W, K=K)
    return pl.pallas_call(
        kernel,
        out_shape=jax.ShapeDtypeStruct((N, 1, H, W), jnp.float32),
        grid=(N,),
        in_specs=[
            pl.BlockSpec((1, C, H, W), lambda n: (n, 0, 0, 0)),
            pl.BlockSpec(memory_space=pltpu.MemorySpace.SMEM),   # small scalar weights
        ],
        out_specs=pl.BlockSpec((1, 1, H, W), lambda n: (n, 0, 0, 0)),
        scratch_shapes=[pltpu.VMEM((2, H + 2 * P, W + 2 * P), jnp.float32)],
        compiler_params=pltpu.CompilerParams(
            dimension_semantics=("parallel",)),
    )(x.astype(jnp.float32), w_flat)


# ----------------------------------------------------------------------------
# Pure-JAX reference (mirrors the PyTorch forward)
# ----------------------------------------------------------------------------
def spatial_attention_ref(x, weight, kernel_size=7):
    P = kernel_size // 2
    avg = jnp.mean(x, axis=1, keepdims=True)
    mx = jnp.max(x, axis=1, keepdims=True)
    cat = jnp.concatenate([avg, mx], axis=1)                  # (N, 2, H, W)
    y = lax.conv_general_dilated(
        cat, weight, window_strides=(1, 1),
        padding=((P, P), (P, P)),
        dimension_numbers=("NCHW", "OIHW", "NCHW"))
    return jax.nn.sigmoid(y)


if __name__ == "__main__":
    key = jax.random.PRNGKey(0)
    kx, kw7, kw3 = jax.random.split(key, 3)

    # Small shapes consistent with the module: batch=2, channels=4, spatial=16.
    x = jax.random.normal(kx, (2, 4, 16, 16), jnp.float32)

    # Default kernel_size=7 (padding=3), bias=False.
    w7 = 0.3 * jax.random.normal(kw7, (1, 2, 7, 7), jnp.float32)
    out7 = jax.block_until_ready(spatial_attention_pallas(x, w7, kernel_size=7))
    ref7 = spatial_attention_ref(x, w7, kernel_size=7)
    err7 = float(jnp.max(jnp.abs(out7 - ref7)))
    assert out7.shape == (2, 1, 16, 16), out7.shape
    assert err7 < 1e-3, f"kernel_size=7 mismatch: {err7}"

    # kernel_size=3 (padding=1) variant also supported by the module.
    w3 = 0.3 * jax.random.normal(kw3, (1, 2, 3, 3), jnp.float32)
    out3 = jax.block_until_ready(spatial_attention_pallas(x, w3, kernel_size=3))
    ref3 = spatial_attention_ref(x, w3, kernel_size=3)
    err3 = float(jnp.max(jnp.abs(out3 - ref3)))
    assert out3.shape == (2, 1, 16, 16), out3.shape
    assert err3 < 1e-3, f"kernel_size=3 mismatch: {err3}"

    print("KERNEL_OK")
</pallas_src>

<mosaic_0001>
module attributes {stable_mosaic.version = 11 : i64} {
  func.func @_spatial_attention_kernel(%arg0: i32, %arg1: memref<1x4x16x16xf32, #tpu.memory_space<vmem>>, %arg2: memref<98xf32, #tpu.memory_space<smem>>, %arg3: memref<1x1x16x16xf32, #tpu.memory_space<vmem>>, %arg4: memref<2x22x22xf32, #tpu.memory_space<vmem>>) attributes {dimension_semantics = [#tpu.dimension_semantics<parallel>], iteration_bounds = array<i64: 2>, scalar_prefetch = 0 : i64, scratch_operands = 1 : i64, tpu.core_type = #tpu.core_type<tc>, window_params = [{transform_indices = @transform_0, window_bounds = array<i64: 1, 4, 16, 16>}, {transform_indices = @transform_1, window_bounds = array<i64: 98>}, {transform_indices = @transform_2, window_bounds = array<i64: 1, 1, 16, 16>}]} {
    %c0 = arith.constant 0 : index
    %c0_0 = arith.constant 0 : index
    %c0_1 = arith.constant 0 : index
    %c0_2 = arith.constant 0 : index
    %0 = vector.load %arg1[%c0, %c0_0, %c0_1, %c0_2] : memref<1x4x16x16xf32, #tpu.memory_space<vmem>>, vector<1x1x16x16xf32>
    %1 = vector.shape_cast %0 : vector<1x1x16x16xf32> to vector<16x16xf32>
    %c0_3 = arith.constant 0 : index
    %c0_4 = arith.constant 0 : index
    %c0_5 = arith.constant 0 : index
    %c0_6 = arith.constant 0 : index
    %2 = vector.load %arg1[%c0_3, %c0_4, %c0_5, %c0_6] : memref<1x4x16x16xf32, #tpu.memory_space<vmem>>, vector<1x1x16x16xf32>
    %3 = vector.shape_cast %2 : vector<1x1x16x16xf32> to vector<16x16xf32>
    %c0_7 = arith.constant 0 : index
    %c1 = arith.constant 1 : index
    %c0_8 = arith.constant 0 : index
    %c0_9 = arith.constant 0 : index
    %4 = vector.load %arg1[%c0_7, %c1, %c0_8, %c0_9] : memref<1x4x16x16xf32, #tpu.memory_space<vmem>>, vector<1x1x16x16xf32>
    %5 = vector.shape_cast %4 : vector<1x1x16x16xf32> to vector<16x16xf32>
    %6 = arith.addf %1, %5 : vector<16x16xf32>
    %7 = arith.maximumf %3, %5 : vector<16x16xf32>
    %c0_10 = arith.constant 0 : index
    %c2 = arith.constant 2 : index
    %c0_11 = arith.constant 0 : index
    %c0_12 = arith.constant 0 : index
    %8 = vector.load %arg1[%c0_10, %c2, %c0_11, %c0_12] : memref<1x4x16x16xf32, #tpu.memory_space<vmem>>, vector<1x1x16x16xf32>
    %9 = vector.shape_cast %8 : vector<1x1x16x16xf32> to vector<16x16xf32>
    %10 = arith.addf %6, %9 : vector<16x16xf32>
    %11 = arith.maximumf %7, %9 : vector<16x16xf32>
    %c0_13 = arith.constant 0 : index
    %c3 = arith.constant 3 : index
    %c0_14 = arith.constant 0 : index
    %c0_15 = arith.constant 0 : index
    %12 = vector.load %arg1[%c0_13, %c3, %c0_14, %c0_15] : memref<1x4x16x16xf32, #tpu.memory_space<vmem>>, vector<1x1x16x16xf32>
    %13 = vector.shape_cast %12 : vector<1x1x16x16xf32> to vector<16x16xf32>
    %14 = arith.addf %10, %13 : vector<16x16xf32>
    %15 = arith.maximumf %11, %13 : vector<16x16xf32>
    %cst = arith.constant 2.500000e-01 : f32
    %16 = vector.broadcast %cst : f32 to vector<16x16xf32>
    %17 = arith.mulf %14, %16 : vector<16x16xf32>
    %cst_16 = arith.constant 0.000000e+00 : f32
    %18 = vector.broadcast %cst_16 : f32 to vector<2x22x22xf32>
    %c0_17 = arith.constant 0 : index
    %c0_18 = arith.constant 0 : index
    %c0_19 = arith.constant 0 : index
    %19 = vector.load %arg4[%c0_17, %c0_18, %c0_19] : memref<2x22x22xf32, #tpu.memory_space<vmem>>, vector<2x22x22xf32>
    tpu.vector_store %arg4[%c0_17, %c0_18, %c0_19], %18 {strides = array<i32>} : memref<2x22x22xf32, #tpu.memory_space<vmem>>, vector<2x22x22xf32>,
    %c0_20 = arith.constant 0 : index
    %c3_21 = arith.constant 3 : index
    %c3_22 = arith.constant 3 : index
    %20 = vector.load %arg4[%c0_20, %c3_21, %c3_22] : memref<2x22x22xf32, #tpu.memory_space<vmem>>, vector<1x16x16xf32>
    %21 = vector.shape_cast %20 : vector<1x16x16xf32> to vector<16x16xf32>
    %22 = vector.shape_cast %17 : vector<16x16xf32> to vector<1x16x16xf32>
    tpu.vector_store %arg4[%c0_20, %c3_21, %c3_22], %22 {strides = array<i32>} : memref<2x22x22xf32, #tpu.memory_space<vmem>>, vector<1x16x16xf32>,
    %c1_23 = arith.constant 1 : index
    %c3_24 = arith.constant 3 : index
    %c3_25 = arith.constant 3 : index
    %23 = vector.load %arg4[%c1_23, %c3_24, %c3_25] : memref<2x22x22xf32, #tpu.memory_space<vmem>>, vector<1x16x16xf32>
    %24 = vector.shape_cast %23 : vector<1x16x16xf32> to vector<16x16xf32>
    %25 = vector.shape_cast %15 : vector<16x16xf32> to vector<1x16x16xf32>
    tpu.vector_store %arg4[%c1_23, %c3_24, %c3_25], %25 {strides = array<i32>} : memref<2x22x22xf32, #tpu.memory_space<vmem>>, vector<1x16x16xf32>,
    %cst_26 = arith.constant 0.000000e+00 : f32
    %26 = vector.broadcast %cst_26 : f32 to vector<16x16xf32>
    %c0_27 = arith.constant 0 : index
    %27 = memref.load %arg2[%c0_27] : memref<98xf32, #tpu.memory_space<smem>>
    %c0_28 = arith.constant 0 : index
    %c0_29 = arith.constant 0 : index
    %c0_30 = arith.constant 0 : index
    %28 = vector.load %arg4[%c0_28, %c0_29, %c0_30] : memref<2x22x22xf32, #tpu.memory_space<vmem>>, vector<1x16x16xf32>
    %29 = vector.shape_cast %28 : vector<1x16x16xf32> to vector<16x16xf32>
    %30 = vector.broadcast %27 : f32 to vector<16x16xf32>
    %31 = arith.mulf %30, %29 : vector<16x16xf32>
    %32 = arith.addf %26, %31 : vector<16x16xf32>
    %c1_31 = arith.constant 1 : index
    %33 = memref.load %arg2[%c1_31] : memref<98xf32, #tpu.memory_space<smem>>
    %c0_32 = arith.constant 0 : index
    %c0_33 = arith.constant 0 : index
    %c1_34 = arith.constant 1 : index
    %34 = vector.load %arg4[%c0_32, %c0_33, %c1_34] : memref<2x22x22xf32, #tpu.memory_space<vmem>>, vector<1x16x16xf32>
    %35 = vector.shape_cast %34 : vector<1x16x16xf32> to vector<16x16xf32>
    %36 = vector.broadcast %33 : f32 to vector<16x16xf32>
    %37 = arith.mulf %36, %35 : vector<16x16xf32>
    %38 = arith.addf %32, %37 : vector<16x16xf32>
    %c2_35 = arith.constant 2 : index
    %39 = memref.load %arg2[%c2_35] : memref<98xf32, #tpu.memory_space<smem>>
    %c0_36 = arith.constant 0 : index
    %c0_37 = arith.constant 0 : index
    %c2_38 = arith.constant 2 : index
    %40 = vector.load %arg4[%c0_36, %c0_37, %c2_38] : memref<2x22x22xf32, #tpu.memory_space<vmem>>, vector<1x16x16xf32>
    %41 = vector.shape_cast %40 : vector<1x16x16xf32> to vector<16x16xf32>
    %42 = vector.broadcast %39 : f32 to vector<16x16xf32>
    %43 = arith.mulf %42, %41 : vector<16x16xf32>
    %44 = arith.addf %38, %43 : vector<16x16xf32>
    %c3_39 = arith.constant 3 : index
    %45 = memref.load %arg2[%c3_39] : memref<98xf32, #tpu.memory_space<smem>>
    %c0_40 = arith.constant 0 : index
    %c0_41 = arith.constant 0 : index
    %c3_42 = arith.constant 3 : index
    %46 = vector.load %arg4[%c0_40, %c0_41, %c3_42] : memref<2x22x22xf32, #tpu.memory_space<vmem>>, vector<1x16x16xf32>
    %47 = vector.shape_cast %46 : vector<1x16x16xf32> to vector<16x16xf32>
    %48 = vector.broadcast %45 : f32 to vector<16x16xf32>
    %49 = arith.mulf %48, %47 : vector<16x16xf32>
    %50 = arith.addf %44, %49 : vector<16x16xf32>
    %c4 = arith.constant 4 : index
    %51 = memref.load %arg2[%c4] : memref<98xf32, #tpu.memory_space<smem>>
    %c0_43 = arith.constant 0 : index
    %c0_44 = arith.constant 0 : index
    %c4_45 = arith.constant 4 : index
    %52 = vector.load %arg4[%c0_43, %c0_44, %c4_45] : memref<2x22x22xf32, #tpu.memory_space<vmem>>, vector<1x16x16xf32>
    %53 = vector.shape_cast %52 : vector<1x16x16xf32> to vector<16x16xf32>
    %54 = vector.broadcast %51 : f32 to vector<16x16xf32>
    %55 = arith.mulf %54, %53 : vector<16x16xf32>
    %56 = arith.addf %50, %55 : vector<16x16xf32>
    %c5 = arith.constant 5 : index
    %57 = memref.load %arg2[%c5] : memref<98xf32, #tpu.memory_space<smem>>
    %c0_46 = arith.constant 0 : index
    %c0_47 = arith.constant 0 : index
    %c5_48 = arith.constant 5 : index
    %58 = vector.load %arg4[%c0_46, %c0_47, %c5_48] : memref<2x22x22xf32, #tpu.memory_space<vmem>>, vector<1x16x16xf32>
    %59 = vector.shape_cast %58 : vector<1x16x16xf32> to vector<16x16xf32>
    %60 = vector.broadcast %57 : f32 to vector<16x16xf32>
    %61 = arith.mulf %60, %59 : vector<16x16xf32>
    %62 = arith.addf %56, %61 : vector<16x16xf32>
    %c6 = arith.constant 6 : index
    %63 = memref.load %arg2[%c6] : memref<98xf32, #tpu.memory_space<smem>>
    %c0_49 = arith.constant 0 : index
    %c0_50 = arith.constant 0 : index
    %c6_51 = arith.constant 6 : index
    %64 = vector.load %arg4[%c0_49, %c0_50, %c6_51] : memref<2x22x22xf32, #tpu.memory_space<vmem>>, vector<1x16x16xf32>
    %65 = vector.shape_cast %64 : vector<1x16x16xf32> to vector<16x16xf32>
    %66 = vector.broadcast %63 : f32 to vector<16x16xf32>
    %67 = arith.mulf %66, %65 : vector<16x16xf32>
    %68 = arith.addf %62, %67 : vector<16x16xf32>
    %c7 = arith.constant 7 : index
    %69 = memref.load %arg2[%c7] : memref<98xf32, #tpu.memory_space<smem>>
    %c0_52 = arith.constant 0 : index
    %c1_53 = arith.constant 1 : index
    %c0_54 = arith.constant 0 : index
    %70 = vector.load %arg4[%c0_52, %c1_53, %c0_54] : memref<2x22x22xf32, #tpu.memory_space<vmem>>, vector<1x16x16xf32>
    %71 = vector.shape_cast %70 : vector<1x16x16xf32> to vector<16x16xf32>
    %72 = vector.broadcast %69 : f32 to vector<16x16xf32>
    %73 = arith.mulf %72, %71 : vector<16x16xf32>
    %74 = arith.addf %68, %73 : vector<16x16xf32>
    %c8 = arith.constant 8 : index
    %75 = memref.load %arg2[%c8] : memref<98xf32, #tpu.memory_space<smem>>
    %c0_55 = arith.constant 0 : index
    %c1_56 = arith.constant 1 : index
    %c1_57 = arith.constant 1 : index
    %76 = vector.load %arg4[%c0_55, %c1_56, %c1_57] : memref<2x22x22xf32, #tpu.memory_space<vmem>>, vector<1x16x16xf32>
    %77 = vector.shape_cast %76 : vector<1x16x16xf32> to vector<16x16xf32>
    %78 = vector.broadcast %75 : f32 to vector<16x16xf32>
    %79 = arith.mulf %78, %77 : vector<16x16xf32>
    %80 = arith.addf %74, %79 : vector<16x16xf32>
    %c9 = arith.constant 9 : index
    %81 = memref.load %arg2[%c9] : memref<98xf32, #tpu.memory_space<smem>>
    %c0_58 = arith.constant 0 : index
    %c1_59 = arith.constant 1 : index
    %c2_60 = arith.constant 2 : index
    %82 = vector.load %arg4[%c0_58, %c1_59, %c2_60] : memref<2x22x22xf32, #tpu.memory_space<vmem>>, vector<1x16x16xf32>
    %83 = vector.shape_cast %82 : vector<1x16x16xf32> to vector<16x16xf32>
    %84 = vector.broadcast %81 : f32 to vector<16x16xf32>
    %85 = arith.mulf %84, %83 : vector<16x16xf32>
    %86 = arith.addf %80, %85 : vector<16x16xf32>
    %c10 = arith.constant 10 : index
    %87 = memref.load %arg2[%c10] : memref<98xf32, #tpu.memory_space<smem>>
    %c0_61 = arith.constant 0 : index
    %c1_62 = arith.constant 1 : index
    %c3_63 = arith.constant 3 : index
    %88 = vector.load %arg4[%c0_61, %c1_62, %c3_63] : memref<2x22x22xf32, #tpu.memory_space<vmem>>, vector<1x16x16xf32>
    %89 = vector.shape_cast %88 : vector<1x16x16xf32> to vector<16x16xf32>
    %90 = vector.broadcast %87 : f32 to vector<16x16xf32>
    %91 = arith.mulf %90, %89 : vector<16x16xf32>
    %92 = arith.addf %86, %91 : vector<16x16xf32>
    %c11 = arith.constant 11 : index
    %93 = memref.load %arg2[%c11] : memref<98xf32, #tpu.memory_space<smem>>
    %c0_64 = arith.constant 0 : index
    %c1_65 = arith.constant 1 : index
    %c4_66 = arith.constant 4 : index
    %94 = vector.load %arg4[%c0_64, %c1_65, %c4_66] : memref<2x22x22xf32, #tpu.memory_space<vmem>>, vector<1x16x16xf32>
    %95 = vector.shape_cast %94 : vector<1x16x16xf32> to vector<16x16xf32>
    %96 = vector.broadcast %93 : f32 to vector<16x16xf32>
    %97 = arith.mulf %96, %95 : vector<16x16xf32>
    %98 = arith.addf %92, %97 : vector<16x16xf32>
    %c12 = arith.constant 12 : index
    %99 = memref.load %arg2[%c12] : memref<98xf32, #tpu.memory_space<smem>>
    %c0_67 = arith.constant 0 : index
    %c1_68 = arith.constant 1 : index
    %c5_69 = arith.constant 5 : index
    %100 = vector.load %arg4[%c0_67, %c1_68, %c5_69] : memref<2x22x22xf32, #tpu.memory_space<vmem>>, vector<1x16x16xf32>
    %101 = vector.shape_cast %100 : vector<1x16x16xf32> to vector<16x16xf32>
    %102 = vector.broadcast %99 : f32 to vector<16x16xf32>
    %103 = arith.mulf %102, %101 : vector<16x16xf32>
    %104 = arith.addf %98, %103 : vector<16x16xf32>
    %c13 = arith.constant 13 : index
    %105 = memref.load %arg2[%c13] : memref<98xf32, #tpu.memory_space<smem>>
    %c0_70 = arith.constant 0 : index
    %c1_71 = arith.constant 1 : index
    %c6_72 = arith.constant 6 : index
    %106 = vector.load %arg4[%c0_70, %c1_71, %c6_72] : memref<2x22x22xf32, #tpu.memory_space<vmem>>, vector<1x16x16xf32>
    %107 = vector.shape_cast %106 : vector<1x16x16xf32> to vector<16x16xf32>
    %108 = vector.broadcast %105 : f32 to vector<16x16xf32>
    %109 = arith.mulf %108, %107 : vector<16x16xf32>
    %110 = arith.addf %104, %109 : vector<16x16xf32>
    %c14 = arith.constant 14 : index
    %111 = memref.load %arg2[%c14] : memref<98xf32, #tpu.memory_space<smem>>
    %c0_73 = arith.constant 0 : index
    %c2_74 = arith.constant 2 : index
    %c0_75 = arith.constant 0 : index
    %112 = vector.load %arg4[%c0_73, %c2_74, %c0_75] : memref<2x22x22xf32, #tpu.memory_space<vmem>>, vector<1x16x16xf32>
    %113 = vector.shape_cast %112 : vector<1x16x16xf32> to vector<16x16xf32>
    %114 = vector.broadcast %111 : f32 to vector<16x16xf32>
    %115 = arith.mulf %114, %113 : vector<16x16xf32>
    %116 = arith.addf %110, %115 : vector<16x16xf32>
    %c15 = arith.constant 15 : index
    %117 = memref.load %arg2[%c15] : memref<98xf32, #tpu.memory_space<smem>>
    %c0_76 = arith.constant 0 : index
    %c2_77 = arith.constant 2 : index
    %c1_78 = arith.constant 1 : index
    %118 = vector.load %arg4[%c0_76, %c2_77, %c1_78] : memref<2x22x22xf32, #tpu.memory_space<vmem>>, vector<1x16x16xf32>
    %119 = vector.shape_cast %118 : vector<1x16x16xf32> to vector<16x16xf32>
    %120 = vector.broadcast %117 : f32 to vector<16x16xf32>
    %121 = arith.mulf %120, %119 : vector<16x16xf32>
    %122 = arith.addf %116, %121 : vector<16x16xf32>
    %c16 = arith.constant 16 : index
    %123 = memref.load %arg2[%c16] : memref<98xf32, #tpu.memory_space<smem>>
    %c0_79 = arith.constant 0 : index
    %c2_80 = arith.constant 2 : index
    %c2_81 = arith.constant 2 : index
    %124 = vector.load %arg4[%c0_79, %c2_80, %c2_81] : memref<2x22x22xf32, #tpu.memory_space<vmem>>, vector<1x16x16xf32>
    %125 = vector.shape_cast %124 : vector<1x16x16xf32> to vector<16x16xf32>
    %126 = vector.broadcast %123 : f32 to vector<16x16xf32>
    %127 = arith.mulf %126, %125 : vector<16x16xf32>
    %128 = arith.addf %122, %127 : vector<16x16xf32>
    %c17 = arith.constant 17 : index
    %129 = memref.load %arg2[%c17] : memref<98xf32, #tpu.memory_space<smem>>
    %c0_82 = arith.constant 0 : index
    %c2_83 = arith.constant 2 : index
    %c3_84 = arith.constant 3 : index
    %130 = vector.load %arg4[%c0_82, %c2_83, %c3_84] : memref<2x22x22xf32, #tpu.memory_space<vmem>>, vector<1x16x16xf32>
    %131 = vector.shape_cast %130 : vector<1x16x16xf32> to vector<16x16xf32>
    %132 = vector.broadcast %129 : f32 to vector<16x16xf32>
    %133 = arith.mulf %132, %131 : vector<16x16xf32>
    %134 = arith.addf %128, %133 : vector<16x16xf32>
    %c18 = arith.constant 18 : index
    %135 = memref.load %arg2[%c18] : memref<98xf32, #tpu.memory_space<smem>>
    %c0_85 = arith.constant 0 : index
    %c2_86 = arith.constant 2 : index
    %c4_87 = arith.constant 4 : index
    %136 = vector.load %arg4[%c0_85, %c2_86, %c4_87] : memref<2x22x22xf32, #tpu.memory_space<vmem>>, vector<1x16x16xf32>
    %137 = vector.shape_cast %136 : vector<1x16x16xf32> to vector<16x16xf32>
    %138 = vector.broadcast %135 : f32 to vector<16x16xf32>
    %139 = arith.mulf %138, %137 : vector<16x16xf32>
    %140 = arith.addf %134, %139 : vector<16x16xf32>
    %c19 = arith.constant 19 : index
    %141 = memref.load %arg2[%c19] : memref<98xf32, #tpu.memory_space<smem>>
    %c0_88 = arith.constant 0 : index
    %c2_89 = arith.constant 2 : index
    %c5_90 = arith.constant 5 : index
    %142 = vector.load %arg4[%c0_88, %c2_89, %c5_90] : memref<2x22x22xf32, #tpu.memory_space<vmem>>, vector<1x16x16xf32>
    %143 = vector.shape_cast %142 : vector<1x16x16xf32> to vector<16x16xf32>
    %144 = vector.broadcast %141 : f32 to vector<16x16xf32>
    %145 = arith.mulf %144, %143 : vector<16x16xf32>
    %146 = arith.addf %140, %145 : vector<16x16xf32>
    %c20 = arith.constant 20 : index
    %147 = memref.load %arg2[%c20] : memref<98xf32, #tpu.memory_space<smem>>
    %c0_91 = arith.constant 0 : index
    %c2_92 = arith.constant 2 : index
    %c6_93 = arith.constant 6 : index
    %148 = vector.load %arg4[%c0_91, %c2_92, %c6_93] : memref<2x22x22xf32, #tpu.memory_space<vmem>>, vector<1x16x16xf32>
    %149 = vector.shape_cast %148 : vector<1x16x16xf32> to vector<16x16xf32>
    %150 = vector.broadcast %147 : f32 to vector<16x16xf32>
    %151 = arith.mulf %150, %149 : vector<16x16xf32>
    %152 = arith.addf %146, %151 : vector<16x16xf32>
    %c21 = arith.constant 21 : index
    %153 = memref.load %arg2[%c21] : memref<98xf32, #tpu.memory_space<smem>>
    %c0_94 = arith.constant 0 : index
    %c3_95 = arith.constant 3 : index
    %c0_96 = arith.constant 0 : index
    %154 = vector.load %arg4[%c0_94, %c3_95, %c0_96] : memref<2x22x22xf32, #tpu.memory_space<vmem>>, vector<1x16x16xf32>
    %155 = vector.shape_cast %154 : vector<1x16x16xf32> to vector<16x16xf32>
    %156 = vector.broadcast %153 : f32 to vector<16x16xf32>
    %157 = arith.mulf %156, %155 : vector<16x16xf32>
    %158 = arith.addf %152, %157 : vector<16x16xf32>
    %c22 = arith.constant 22 : index
    %159 = memref.load %arg2[%c22] : memref<98xf32, #tpu.memory_space<smem>>
    %c0_97 = arith.constant 0 : index
    %c3_98 = arith.constant 3 : index
    %c1_99 = arith.constant 1 : index
    %160 = vector.load %arg4[%c0_97, %c3_98, %c1_99] : memref<2x22x22xf32, #tpu.memory_space<vmem>>, vector<1x16x16xf32>
    %161 = vector.shape_cast %160 : vector<1x16x16xf32> to vector<16x16xf32>
    %162 = vector.broadcast %159 : f32 to vector<16x16xf32>
    %163 = arith.mulf %162, %161 : vector<16x16xf32>
    %164 = arith.addf %158, %163 : vector<16x16xf32>
    %c23 = arith.constant 23 : index
    %165 = memref.load %arg2[%c23] : memref<98xf32, #tpu.memory_space<smem>>
    %c0_100 = arith.constant 0 : index
    %c3_101 = arith.constant 3 : index
    %c2_102 = arith.constant 2 : index
    %166 = vector.load %arg4[%c0_100, %c3_101, %c2_102] : memref<2x22x22xf32, #tpu.memory_space<vmem>>, vector<1x16x16xf32>
    %167 = vector.shape_cast %166 : vector<1x16x16xf32> to vector<16x16xf32>
    %168 = vector.broadcast %165 : f32 to vector<16x16xf32>
    %169 = arith.mulf %168, %167 : vector<16x16xf32>
    %170 = arith.addf %164, %169 : vector<16x16xf32>
    %c24 = arith.constant 24 : index
    %171 = memref.load %arg2[%c24] : memref<98xf32, #tpu.memory_space<smem>>
    %c0_103 = arith.constant 0 : index
    %c3_104 = arith.constant 3 : index
    %c3_105 = arith.constant 3 : index
    %172 = vector.load %arg4[%c0_103, %c3_104, %c3_105] : memref<2x22x22xf32, #tpu.memory_space<vmem>>, vector<1x16x16xf32>
    %173 = vector.shape_cast %172 : vector<1x16x16xf32> to vector<16x16xf32>
    %174 = vector.broadcast %171 : f32 to vector<16x16xf32>
    %175 = arith.mulf %174, %173 : vector<16x16xf32>
    %176 = arith.addf %170, %175 : vector<16x16xf32>
    %c25 = arith.constant 25 : index
    %177 = memref.load %arg2[%c25] : memref<98xf32, #tpu.memory_space<smem>>
    %c0_106 = arith.constant 0 : index
    %c3_107 = arith.constant 3 : index
    %c4_108 = arith.constant 4 : index
    %178 = vector.load %arg4[%c0_106, %c3_107, %c4_108] : memref<2x22x22xf32, #tpu.memory_space<vmem>>, vector<1x16x16xf32>
    %179 = vector.shape_cast %178 : vector<1x16x16xf32> to vector<16x16xf32>
    %180 = vector.broadcast %177 : f32 to vector<16x16xf32>
    %181 = arith.mulf %180, %179 : vector<16x16xf32>
    %182 = arith.addf %176, %181 : vector<16x16xf32>
    %c26 = arith.constant 26 : index
    %183 = memref.load %arg2[%c26] : memref<98xf32, #tpu.memory_space<smem>>
    %c0_109 = arith.constant 0 : index
    %c3_110 = arith.constant 3 : index
    %c5_111 = arith.constant 5 : index
    %184 = vector.load %arg4[%c0_109, %c3_110, %c5_111] : memref<2x22x22xf32, #tpu.memory_space<vmem>>, vector<1x16x16xf32>
    %185 = vector.shape_cast %184 : vector<1x16x16xf32> to vector<16x16xf32>
    %186 = vector.broadcast %183 : f32 to vector<16x16xf32>
    %187 = arith.mulf %186, %185 : vector<16x16xf32>
    %188 = arith.addf %182, %187 : vector<16x16xf32>
    %c27 = arith.constant 27 : index
    %189 = memref.load %arg2[%c27] : memref<98xf32, #tpu.memory_space<smem>>
    %c0_112 = arith.constant 0 : index
    %c3_113 = arith.constant 3 : index
    %c6_114 = arith.constant 6 : index
    %190 = vector.load %arg4[%c0_112, %c3_113, %c6_114] : memref<2x22x22xf32, #tpu.memory_space<vmem>>, vector<1x16x16xf32>
    %191 = vector.shape_cast %190 : vector<1x16x16xf32> to vector<16x16xf32>
    %192 = vector.broadcast %189 : f32 to vector<16x16xf32>
    %193 = arith.mulf %192, %191 : vector<16x16xf32>
    %194 = arith.addf %188, %193 : vector<16x16xf32>
    %c28 = arith.constant 28 : index
    %195 = memref.load %arg2[%c28] : memref<98xf32, #tpu.memory_space<smem>>
    %c0_115 = arith.constant 0 : index
    %c4_116 = arith.constant 4 : index
    %c0_117 = arith.constant 0 : index
    %196 = vector.load %arg4[%c0_115, %c4_116, %c0_117] : memref<2x22x22xf32, #tpu.memory_space<vmem>>, vector<1x16x16xf32>
    %197 = vector.shape_cast %196 : vector<1x16x16xf32> to vector<16x16xf32>
    %198 = vector.broadcast %195 : f32 to vector<16x16xf32>
    %199 = arith.mulf %198, %197 : vector<16x16xf32>
    %200 = arith.addf %194, %199 : vector<16x16xf32>
    %c29 = arith.constant 29 : index
    %201 = memref.load %arg2[%c29] : memref<98xf32, #tpu.memory_space<smem>>
    %c0_118 = arith.constant 0 : index
    %c4_119 = arith.constant 4 : index
    %c1_120 = arith.constant 1 : index
    %202 = vector.load %arg4[%c0_118, %c4_119, %c1_120] : memref<2x22x22xf32, #tpu.memory_space<vmem>>, vector<1x16x16xf32>
    %203 = vector.shape_cast %202 : vector<1x16x16xf32> to vector<16x16xf32>
    %204 = vector.broadcast %201 : f32 to vector<16x16xf32>
    %205 = arith.mulf %204, %203 : vector<16x16xf32>
    %206 = arith.addf %200, %205 : vector<16x16xf32>
    %c30 = arith.constant 30 : index
    %207 = memref.load %arg2[%c30] : memref<98xf32, #tpu.memory_space<smem>>
    %c0_121 = arith.constant 0 : index
    %c4_122 = arith.constant 4 : index
    %c2_123 = arith.constant 2 : index
    %208 = vector.load %arg4[%c0_121, %c4_122, %c2_123] : memref<2x22x22xf32, #tpu.memory_space<vmem>>, vector<1x16x16xf32>
    %209 = vector.shape_cast %208 : vector<1x16x16xf32> to vector<16x16xf32>
    %210 = vector.broadcast %207 : f32 to vector<16x16xf32>
    %211 = arith.mulf %210, %209 : vector<16x16xf32>
    %212 = arith.addf %206, %211 : vector<16x16xf32>
    %c31 = arith.constant 31 : index
    %213 = memref.load %arg2[%c31] : memref<98xf32, #tpu.memory_space<smem>>
    %c0_124 = arith.constant 0 : index
    %c4_125 = arith.constant 4 : index
    %c3_126 = arith.constant 3 : index
    %214 = vector.load %arg4[%c0_124, %c4_125, %c3_126] : memref<2x22x22xf32, #tpu.memory_space<vmem>>, vector<1x16x16xf32>
    %215 = vector.shape_cast %214 : vector<1x16x16xf32> to vector<16x16xf32>
    %216 = vector.broadcast %213 : f32 to vector<16x16xf32>
    %217 = arith.mulf %216, %215 : vector<16x16xf32>
    %218 = arith.addf %212, %217 : vector<16x16xf32>
    %c32 = arith.constant 32 : index
    %219 = memref.load %arg2[%c32] : memref<98xf32, #tpu.memory_space<smem>>
    %c0_127 = arith.constant 0 : index
    %c4_128 = arith.constant 4 : index
    %c4_129 = arith.constant 4 : index
    %220 = vector.load %arg4[%c0_127, %c4_128, %c4_129] : memref<2x22x22xf32, #tpu.memory_space<vmem>>, vector<1x16x16xf32>
    %221 = vector.shape_cast %220 : vector<1x16x16xf32> to vector<16x16xf32>
    %222 = vector.broadcast %219 : f32 to vector<16x16xf32>
    %223 = arith.mulf %222, %221 : vector<16x16xf32>
    %224 = arith.addf %218, %223 : vector<16x16xf32>
    %c33 = arith.constant 33 : index
    %225 = memref.load %arg2[%c33] : memref<98xf32, #tpu.memory_space<smem>>
    %c0_130 = arith.constant 0 : index
    %c4_131 = arith.constant 4 : index
    %c5_132 = arith.constant 5 : index
    %226 = vector.load %arg4[%c0_130, %c4_131, %c5_132] : memref<2x22x22xf32, #tpu.memory_space<vmem>>, vector<1x16x16xf32>
    %227 = vector.shape_cast %226 : vector<1x16x16xf32> to vector<16x16xf32>
    %228 = vector.broadcast %225 : f32 to vector<16x16xf32>
    %229 = arith.mulf %228, %227 : vector<16x16xf32>
    %230 = arith.addf %224, %229 : vector<16x16xf32>
    %c34 = arith.constant 34 : index
    %231 = memref.load %arg2[%c34] : memref<98xf32, #tpu.memory_space<smem>>
    %c0_133 = arith.constant 0 : index
    %c4_134 = arith.constant 4 : index
    %c6_135 = arith.constant 6 : index
    %232 = vector.load %arg4[%c0_133, %c4_134, %c6_135] : memref<2x22x22xf32, #tpu.memory_space<vmem>>, vector<1x16x16xf32>
    %233 = vector.shape_cast %232 : vector<1x16x16xf32> to vector<16x16xf32>
    %234 = vector.broadcast %231 : f32 to vector<16x16xf32>
    %235 = arith.mulf %234, %233 : vector<16x16xf32>
    %236 = arith.addf %230, %235 : vector<16x16xf32>
    %c35 = arith.constant 35 : index
    %237 = memref.load %arg2[%c35] : memref<98xf32, #tpu.memory_space<smem>>
    %c0_136 = arith.constant 0 : index
    %c5_137 = arith.constant 5 : index
    %c0_138 = arith.constant 0 : index
    %238 = vector.load %arg4[%c0_136, %c5_137, %c0_138] : memref<2x22x22xf32, #tpu.memory_space<vmem>>, vector<1x16x16xf32>
    %239 = vector.shape_cast %238 : vector<1x16x16xf32> to vector<16x16xf32>
    %240 = vector.broadcast %237 : f32 to vector<16x16xf32>
    %241 = arith.mulf %240, %239 : vector<16x16xf32>
    %242 = arith.addf %236, %241 : vector<16x16xf32>
    %c36 = arith.constant 36 : index
    %243 = memref.load %arg2[%c36] : memref<98xf32, #tpu.memory_space<smem>>
    %c0_139 = arith.constant 0 : index
    %c5_140 = arith.constant 5 : index
    %c1_141 = arith.constant 1 : index
    %244 = vector.load %arg4[%c0_139, %c5_140, %c1_141] : memref<2x22x22xf32, #tpu.memory_space<vmem>>, vector<1x16x16xf32>
    %245 = vector.shape_cast %244 : vector<1x16x16xf32> to vector<16x16xf32>
    %246 = vector.broadcast %243 : f32 to vector<16x16xf32>
    %247 = arith.mulf %246, %245 : vector<16x16xf32>
    %248 = arith.addf %242, %247 : vector<16x16xf32>
    %c37 = arith.constant 37 : index
    %249 = memref.load %arg2[%c37] : memref<98xf32, #tpu.memory_space<smem>>
    %c0_142 = arith.constant 0 : index
    %c5_143 = arith.constant 5 : index
    %c2_144 = arith.constant 2 : index
    %250 = vector.load %arg4[%c0_142, %c5_143, %c2_144] : memref<2x22x22xf32, #tpu.memory_space<vmem>>, vector<1x16x16xf32>
    %251 = vector.shape_cast %250 : vector<1x16x16xf32> to vector<16x16xf32>
    %252 = vector.broadcast %249 : f32 to vector<16x16xf32>
    %253 = arith.mulf %252, %251 : vector<16x16xf32>
    %254 = arith.addf %248, %253 : vector<16x16xf32>
    %c38 = arith.constant 38 : index
    %255 = memref.load %arg2[%c38] : memref<98xf32, #tpu.memory_space<smem>>
    %c0_145 = arith.constant 0 : index
    %c5_146 = arith.constant 5 : index
    %c3_147 = arith.constant 3 : index
    %256 = vector.load %arg4[%c0_145, %c5_146, %c3_147] : memref<2x22x22xf32, #tpu.memory_space<vmem>>, vector<1x16x16xf32>
    %257 = vector.shape_cast %256 : vector<1x16x16xf32> to vector<16x16xf32>
    %258 = vector.broadcast %255 : f32 to vector<16x16xf32>
    %259 = arith.mulf %258, %257 : vector<16x16xf32>
    %260 = arith.addf %254, %259 : vector<16x16xf32>
    %c39 = arith.constant 39 : index
    %261 = memref.load %arg2[%c39] : memref<98xf32, #tpu.memory_space<smem>>
    %c0_148 = arith.constant 0 : index
    %c5_149 = arith.constant 5 : index
    %c4_150 = arith.constant 4 : index
    %262 = vector.load %arg4[%c0_148, %c5_149, %c4_150] : memref<2x22x22xf32, #tpu.memory_space<vmem>>, vector<1x16x16xf32>
    %263 = vector.shape_cast %262 : vector<1x16x16xf32> to vector<16x16xf32>
    %264 = vector.broadcast %261 : f32 to vector<16x16xf32>
    %265 = arith.mulf %264, %263 : vector<16x16xf32>
    %266 = arith.addf %260, %265 : vector<16x16xf32>
    %c40 = arith.constant 40 : index
    %267 = memref.load %arg2[%c40] : memref<98xf32, #tpu.memory_space<smem>>
    %c0_151 = arith.constant 0 : index
    %c5_152 = arith.constant 5 : index
    %c5_153 = arith.constant 5 : index
    %268 = vector.load %arg4[%c0_151, %c5_152, %c5_153] : memref<2x22x22xf32, #tpu.memory_space<vmem>>, vector<1x16x16xf32>
    %269 = vector.shape_cast %268 : vector<1x16x16xf32> to vector<16x16xf32>
    %270 = vector.broadcast %267 : f32 to vector<16x16xf32>
    %271 = arith.mulf %270, %269 : vector<16x16xf32>
    %272 = arith.addf %266, %271 : vector<16x16xf32>
    %c41 = arith.constant 41 : index
    %273 = memref.load %arg2[%c41] : memref<98xf32, #tpu.memory_space<smem>>
    %c0_154 = arith.constant 0 : index
    %c5_155 = arith.constant 5 : index
    %c6_156 = arith.constant 6 : index
    %274 = vector.load %arg4[%c0_154, %c5_155, %c6_156] : memref<2x22x22xf32, #tpu.memory_space<vmem>>, vector<1x16x16xf32>
    %275 = vector.shape_cast %274 : vector<1x16x16xf32> to vector<16x16xf32>
    %276 = vector.broadcast %273 : f32 to vector<16x16xf32>
    %277 = arith.mulf %276, %275 : vector<16x16xf32>
    %278 = arith.addf %272, %277 : vector<16x16xf32>
    %c42 = arith.constant 42 : index
    %279 = memref.load %arg2[%c42] : memref<98xf32, #tpu.memory_space<smem>>
    %c0_157 = arith.constant 0 : index
    %c6_158 = arith.constant 6 : index
    %c0_159 = arith.constant 0 : index
    %280 = vector.load %arg4[%c0_157, %c6_158, %c0_159] : memref<2x22x22xf32, #tpu.memory_space<vmem>>, vector<1x16x16xf32>
    %281 = vector.shape_cast %280 : vector<1x16x16xf32> to vector<16x16xf32>
    %282 = vector.broadcast %279 : f32 to vector<16x16xf32>
    %283 = arith.mulf %282, %281 : vector<16x16xf32>
    %284 = arith.addf %278, %283 : vector<16x16xf32>
    %c43 = arith.constant 43 : index
    %285 = memref.load %arg2[%c43] : memref<98xf32, #tpu.memory_space<smem>>
    %c0_160 = arith.constant 0 : index
    %c6_161 = arith.constant 6 : index
    %c1_162 = arith.constant 1 : index
    %286 = vector.load %arg4[%c0_160, %c6_161, %c1_162] : memref<2x22x22xf32, #tpu.memory_space<vmem>>, vector<1x16x16xf32>
    %287 = vector.shape_cast %286 : vector<1x16x16xf32> to vector<16x16xf32>
    %288 = vector.broadcast %285 : f32 to vector<16x16xf32>
    %289 = arith.mulf %288, %287 : vector<16x16xf32>
    %290 = arith.addf %284, %289 : vector<16x16xf32>
    %c44 = arith.constant 44 : index
    %291 = memref.load %arg2[%c44] : memref<98xf32, #tpu.memory_space<smem>>
    %c0_163 = arith.constant 0 : index
    %c6_164 = arith.constant 6 : index
    %c2_165 = arith.constant 2 : index
    %292 = vector.load %arg4[%c0_163, %c6_164, %c2_165] : memref<2x22x22xf32, #tpu.memory_space<vmem>>, vector<1x16x16xf32>
    %293 = vector.shape_cast %292 : vector<1x16x16xf32> to vector<16x16xf32>
    %294 = vector.broadcast %291 : f32 to vector<16x16xf32>
    %295 = arith.mulf %294, %293 : vector<16x16xf32>
    %296 = arith.addf %290, %295 : vector<16x16xf32>
    %c45 = arith.constant 45 : index
    %297 = memref.load %arg2[%c45] : memref<98xf32, #tpu.memory_space<smem>>
    %c0_166 = arith.constant 0 : index
    %c6_167 = arith.constant 6 : index
    %c3_168 = arith.constant 3 : index
    %298 = vector.load %arg4[%c0_166, %c6_167, %c3_168] : memref<2x22x22xf32, #tpu.memory_space<vmem>>, vector<1x16x16xf32>
    %299 = vector.shape_cast %298 : vector<1x16x16xf32> to vector<16x16xf32>
    %300 = vector.broadcast %297 : f32 to vector<16x16xf32>
    %301 = arith.mulf %300, %299 : vector<16x16xf32>
    %302 = arith.addf %296, %301 : vector<16x16xf32>
    %c46 = arith.constant 46 : index
    %303 = memref.load %arg2[%c46] : memref<98xf32, #tpu.memory_space<smem>>
    %c0_169 = arith.constant 0 : index
    %c6_170 = arith.constant 6 : index
    %c4_171 = arith.constant 4 : index
    %304 = vector.load %arg4[%c0_169, %c6_170, %c4_171] : memref<2x22x22xf32, #tpu.memory_space<vmem>>, vector<1x16x16xf32>
    %305 = vector.shape_cast %304 : vector<1x16x16xf32> to vector<16x16xf32>
    %306 = vector.broadcast %303 : f32 to vector<16x16xf32>
    %307 = arith.mulf %306, %305 : vector<16x16xf32>
    %308 = arith.addf %302, %307 : vector<16x16xf32>
    %c47 = arith.constant 47 : index
    %309 = memref.load %arg2[%c47] : memref<98xf32, #tpu.memory_space<smem>>
    %c0_172 = arith.constant 0 : index
    %c6_173 = arith.constant 6 : index
    %c5_174 = arith.constant 5 : index
    %310 = vector.load %arg4[%c0_172, %c6_173, %c5_174] : memref<2x22x22xf32, #tpu.memory_space<vmem>>, vector<1x16x16xf32>
    %311 = vector.shape_cast %310 : vector<1x16x16xf32> to vector<16x16xf32>
    %312 = vector.broadcast %309 : f32 to vector<16x16xf32>
    %313 = arith.mulf %312, %311 : vector<16x16xf32>
    %314 = arith.addf %308, %313 : vector<16x16xf32>
    %c48 = arith.constant 48 : index
    %315 = memref.load %arg2[%c48] : memref<98xf32, #tpu.memory_space<smem>>
    %c0_175 = arith.constant 0 : index
    %c6_176 = arith.constant 6 : index
    %c6_177 = arith.constant 6 : index
    %316 = vector.load %arg4[%c0_175, %c6_176, %c6_177] : memref<2x22x22xf32, #tpu.memory_space<vmem>>, vector<1x16x16xf32>
    %317 = vector.shape_cast %316 : vector<1x16x16xf32> to vector<16x16xf32>
    %318 = vector.broadcast %315 : f32 to vector<16x16xf32>
    %319 = arith.mulf %318, %317 : vector<16x16xf32>
    %320 = arith.addf %314, %319 : vector<16x16xf32>
    %c49 = arith.constant 49 : index
    %321 = memref.load %arg2[%c49] : memref<98xf32, #tpu.memory_space<smem>>
    %c1_178 = arith.constant 1 : index
    %c0_179 = arith.constant 0 : index
    %c0_180 = arith.constant 0 : index
    %322 = vector.load %arg4[%c1_178, %c0_179, %c0_180] : memref<2x22x22xf32, #tpu.memory_space<vmem>>, vector<1x16x16xf32>
    %323 = vector.shape_cast %322 : vector<1x16x16xf32> to vector<16x16xf32>
    %324 = vector.broadcast %321 : f32 to vector<16x16xf32>
    %325 = arith.mulf %324, %323 : vector<16x16xf32>
    %326 = arith.addf %320, %325 : vector<16x16xf32>
    %c50 = arith.constant 50 : index
    %327 = memref.load %arg2[%c50] : memref<98xf32, #tpu.memory_space<smem>>
    %c1_181 = arith.constant 1 : index
    %c0_182 = arith.constant 0 : index
    %c1_183 = arith.constant 1 : index
    %328 = vector.load %arg4[%c1_181, %c0_182, %c1_183] : memref<2x22x22xf32, #tpu.memory_space<vmem>>, vector<1x16x16xf32>
    %329 = vector.shape_cast %328 : vector<1x16x16xf32> to vector<16x16xf32>
    %330 = vector.broadcast %327 : f32 to vector<16x16xf32>
    %331 = arith.mulf %330, %329 : vector<16x16xf32>
    %332 = arith.addf %326, %331 : vector<16x16xf32>
    %c51 = arith.constant 51 : index
    %333 = memref.load %arg2[%c51] : memref<98xf32, #tpu.memory_space<smem>>
    %c1_184 = arith.constant 1 : index
    %c0_185 = arith.constant 0 : index
    %c2_186 = arith.constant 2 : index
    %334 = vector.load %arg4[%c1_184, %c0_185, %c2_186] : memref<2x22x22xf32, #tpu.memory_space<vmem>>, vector<1x16x16xf32>
    %335 = vector.shape_cast %334 : vector<1x16x16xf32> to vector<16x16xf32>
    %336 = vector.broadcast %333 : f32 to vector<16x16xf32>
    %337 = arith.mulf %336, %335 : vector<16x16xf32>
    %338 = arith.addf %332, %337 : vector<16x16xf32>
    %c52 = arith.constant 52 : index
    %339 = memref.load %arg2[%c52] : memref<98xf32, #tpu.memory_space<smem>>
    %c1_187 = arith.constant 1 : index
    %c0_188 = arith.constant 0 : index
    %c3_189 = arith.constant 3 : index
    %340 = vector.load %arg4[%c1_187, %c0_188, %c3_189] : memref<2x22x22xf32, #tpu.memory_space<vmem>>, vector<1x16x16xf32>
    %341 = vector.shape_cast %340 : vector<1x16x16xf32> to vector<16x16xf32>
    %342 = vector.broadcast %339 : f32 to vector<16x16xf32>
    %343 = arith.mulf %342, %341 : vector<16x16xf32>
    %344 = arith.addf %338, %343 : vector<16x16xf32>
    %c53 = arith.constant 53 : index
    %345 = memref.load %arg2[%c53] : memref<98xf32, #tpu.memory_space<smem>>
    %c1_190 = arith.constant 1 : index
    %c0_191 = arith.constant 0 : index
    %c4_192 = arith.constant 4 : index
    %346 = vector.load %arg4[%c1_190, %c0_191, %c4_192] : memref<2x22x22xf32, #tpu.memory_space<vmem>>, vector<1x16x16xf32>
    %347 = vector.shape_cast %346 : vector<1x16x16xf32> to vector<16x16xf32>
    %348 = vector.broadcast %345 : f32 to vector<16x16xf32>
    %349 = arith.mulf %348, %347 : vector<16x16xf32>
    %350 = arith.addf %344, %349 : vector<16x16xf32>
    %c54 = arith.constant 54 : index
    %351 = memref.load %arg2[%c54] : memref<98xf32, #tpu.memory_space<smem>>
    %c1_193 = arith.constant 1 : index
    %c0_194 = arith.constant 0 : index
    %c5_195 = arith.constant 5 : index
    %352 = vector.load %arg4[%c1_193, %c0_194, %c5_195] : memref<2x22x22xf32, #tpu.memory_space<vmem>>, vector<1x16x16xf32>
    %353 = vector.shape_cast %352 : vector<1x16x16xf32> to vector<16x16xf32>
    %354 = vector.broadcast %351 : f32 to vector<16x16xf32>
    %355 = arith.mulf %354, %353 : vector<16x16xf32>
    %356 = arith.addf %350, %355 : vector<16x16xf32>
    %c55 = arith.constant 55 : index
    %357 = memref.load %arg2[%c55] : memref<98xf32, #tpu.memory_space<smem>>
    %c1_196 = arith.constant 1 : index
    %c0_197 = arith.constant 0 : index
    %c6_198 = arith.constant 6 : index
    %358 = vector.load %arg4[%c1_196, %c0_197, %c6_198] : memref<2x22x22xf32, #tpu.memory_space<vmem>>, vector<1x16x16xf32>
    %359 = vector.shape_cast %358 : vector<1x16x16xf32> to vector<16x16xf32>
    %360 = vector.broadcast %357 : f32 to vector<16x16xf32>
    %361 = arith.mulf %360, %359 : vector<16x16xf32>
    %362 = arith.addf %356, %361 : vector<16x16xf32>
    %c56 = arith.constant 56 : index
    %363 = memref.load %arg2[%c56] : memref<98xf32, #tpu.memory_space<smem>>
    %c1_199 = arith.constant 1 : index
    %c1_200 = arith.constant 1 : index
    %c0_201 = arith.constant 0 : index
    %364 = vector.load %arg4[%c1_199, %c1_200, %c0_201] : memref<2x22x22xf32, #tpu.memory_space<vmem>>, vector<1x16x16xf32>
    %365 = vector.shape_cast %364 : vector<1x16x16xf32> to vector<16x16xf32>
    %366 = vector.broadcast %363 : f32 to vector<16x16xf32>
    %367 = arith.mulf %366, %365 : vector<16x16xf32>
    %368 = arith.addf %362, %367 : vector<16x16xf32>
    %c57 = arith.constant 57 : index
    %369 = memref.load %arg2[%c57] : memref<98xf32, #tpu.memory_space<smem>>
    %c1_202 = arith.constant 1 : index
    %c1_203 = arith.constant 1 : index
    %c1_204 = arith.constant 1 : index
    %370 = vector.load %arg4[%c1_202, %c1_203, %c1_204] : memref<2x22x22xf32, #tpu.memory_space<vmem>>, vector<1x16x16xf32>
    %371 = vector.shape_cast %370 : vector<1x16x16xf32> to vector<16x16xf32>
    %372 = vector.broadcast %369 : f32 to vector<16x16xf32>
    %373 = arith.mulf %372, %371 : vector<16x16xf32>
    %374 = arith.addf %368, %373 : vector<16x16xf32>
    %c58 = arith.constant 58 : index
    %375 = memref.load %arg2[%c58] : memref<98xf32, #tpu.memory_space<smem>>
    %c1_205 = arith.constant 1 : index
    %c1_206 = arith.constant 1 : index
    %c2_207 = arith.constant 2 : index
    %376 = vector.load %arg4[%c1_205, %c1_206, %c2_207] : memref<2x22x22xf32, #tpu.memory_space<vmem>>, vector<1x16x16xf32>
    %377 = vector.shape_cast %376 : vector<1x16x16xf32> to vector<16x16xf32>
    %378 = vector.broadcast %375 : f32 to vector<16x16xf32>
    %379 = arith.mulf %378, %377 : vector<16x16xf32>
    %380 = arith.addf %374, %379 : vector<16x16xf32>
    %c59 = arith.constant 59 : index
    %381 = memref.load %arg2[%c59] : memref<98xf32, #tpu.memory_space<smem>>
    %c1_208 = arith.constant 1 : index
    %c1_209 = arith.constant 1 : index
    %c3_210 = arith.constant 3 : index
    %382 = vector.load %arg4[%c1_208, %c1_209, %c3_210] : memref<2x22x22xf32, #tpu.memory_space<vmem>>, vector<1x16x16xf32>
    %383 = vector.shape_cast %382 : vector<1x16x16xf32> to vector<16x16xf32>
    %384 = vector.broadcast %381 : f32 to vector<16x16xf32>
    %385 = arith.mulf %384, %383 : vector<16x16xf32>
    %386 = arith.addf %380, %385 : vector<16x16xf32>
    %c60 = arith.constant 60 : index
    %387 = memref.load %arg2[%c60] : memref<98xf32, #tpu.memory_space<smem>>
    %c1_211 = arith.constant 1 : index
    %c1_212 = arith.constant 1 : index
    %c4_213 = arith.constant 4 : index
    %388 = vector.load %arg4[%c1_211, %c1_212, %c4_213] : memref<2x22x22xf32, #tpu.memory_space<vmem>>, vector<1x16x16xf32>
    %389 = vector.shape_cast %388 : vector<1x16x16xf32> to vector<16x16xf32>
    %390 = vector.broadcast %387 : f32 to vector<16x16xf32>
    %391 = arith.mulf %390, %389 : vector<16x16xf32>
    %392 = arith.addf %386, %391 : vector<16x16xf32>
    %c61 = arith.constant 61 : index
    %393 = memref.load %arg2[%c61] : memref<98xf32, #tpu.memory_space<smem>>
    %c1_214 = arith.constant 1 : index
    %c1_215 = arith.constant 1 : index
    %c5_216 = arith.constant 5 : index
    %394 = vector.load %arg4[%c1_214, %c1_215, %c5_216] : memref<2x22x22xf32, #tpu.memory_space<vmem>>, vector<1x16x16xf32>
    %395 = vector.shape_cast %394 : vector<1x16x16xf32> to vector<16x16xf32>
    %396 = vector.broadcast %393 : f32 to vector<16x16xf32>
    %397 = arith.mulf %396, %395 : vector<16x16xf32>
    %398 = arith.addf %392, %397 : vector<16x16xf32>
    %c62 = arith.constant 62 : index
    %399 = memref.load %arg2[%c62] : memref<98xf32, #tpu.memory_space<smem>>
    %c1_217 = arith.constant 1 : index
    %c1_218 = arith.constant 1 : index
    %c6_219 = arith.constant 6 : index
    %400 = vector.load %arg4[%c1_217, %c1_218, %c6_219] : memref<2x22x22xf32, #tpu.memory_space<vmem>>, vector<1x16x16xf32>
    %401 = vector.shape_cast %400 : vector<1x16x16xf32> to vector<16x16xf32>
    %402 = vector.broadcast %399 : f32 to vector<16x16xf32>
    %403 = arith.mulf %402, %401 : vector<16x16xf32>
    %404 = arith.addf %398, %403 : vector<16x16xf32>
    %c63 = arith.constant 63 : index
    %405 = memref.load %arg2[%c63] : memref<98xf32, #tpu.memory_space<smem>>
    %c1_220 = arith.constant 1 : index
    %c2_221 = arith.constant 2 : index
    %c0_222 = arith.constant 0 : index
    %406 = vector.load %arg4[%c1_220, %c2_221, %c0_222] : memref<2x22x22xf32, #tpu.memory_space<vmem>>, vector<1x16x16xf32>
    %407 = vector.shape_cast %406 : vector<1x16x16xf32> to vector<16x16xf32>
    %408 = vector.broadcast %405 : f32 to vector<16x16xf32>
    %409 = arith.mulf %408, %407 : vector<16x16xf32>
    %410 = arith.addf %404, %409 : vector<16x16xf32>
    %c64 = arith.constant 64 : index
    %411 = memref.load %arg2[%c64] : memref<98xf32, #tpu.memory_space<smem>>
    %c1_223 = arith.constant 1 : index
    %c2_224 = arith.constant 2 : index
    %c1_225 = arith.constant 1 : index
    %412 = vector.load %arg4[%c1_223, %c2_224, %c1_225] : memref<2x22x22xf32, #tpu.memory_space<vmem>>, vector<1x16x16xf32>
    %413 = vector.shape_cast %412 : vector<1x16x16xf32> to vector<16x16xf32>
    %414 = vector.broadcast %411 : f32 to vector<16x16xf32>
    %415 = arith.mulf %414, %413 : vector<16x16xf32>
    %416 = arith.addf %410, %415 : vector<16x16xf32>
    %c65 = arith.constant 65 : index
    %417 = memref.load %arg2[%c65] : memref<98xf32, #tpu.memory_space<smem>>
    %c1_226 = arith.constant 1 : index
    %c2_227 = arith.constant 2 : index
    %c2_228 = arith.constant 2 : index
    %418 = vector.load %arg4[%c1_226, %c2_227, %c2_228] : memref<2x22x22xf32, #tpu.memory_space<vmem>>, vector<1x16x16xf32>
    %419 = vector.shape_cast %418 : vector<1x16x16xf32> to vector<16x16xf32>
    %420 = vector.broadcast %417 : f32 to vector<16x16xf32>
    %421 = arith.mulf %420, %419 : vector<16x16xf32>
    %422 = arith.addf %416, %421 : vector<16x16xf32>
    %c66 = arith.constant 66 : index
    %423 = memref.load %arg2[%c66] : memref<98xf32, #tpu.memory_space<smem>>
    %c1_229 = arith.constant 1 : index
    %c2_230 = arith.constant 2 : index
    %c3_231 = arith.constant 3 : index
    %424 = vector.load %arg4[%c1_229, %c2_230, %c3_231] : memref<2x22x22xf32, #tpu.memory_space<vmem>>, vector<1x16x16xf32>
    %425 = vector.shape_cast %424 : vector<1x16x16xf32> to vector<16x16xf32>
    %426 = vector.broadcast %423 : f32 to vector<16x16xf32>
    %427 = arith.mulf %426, %425 : vector<16x16xf32>
    %428 = arith.addf %422, %427 : vector<16x16xf32>
    %c67 = arith.constant 67 : index
    %429 = memref.load %arg2[%c67] : memref<98xf32, #tpu.memory_space<smem>>
    %c1_232 = arith.constant 1 : index
    %c2_233 = arith.constant 2 : index
    %c4_234 = arith.constant 4 : index
    %430 = vector.load %arg4[%c1_232, %c2_233, %c4_234] : memref<2x22x22xf32, #tpu.memory_space<vmem>>, vector<1x16x16xf32>
    %431 = vector.shape_cast %430 : vector<1x16x16xf32> to vector<16x16xf32>
    %432 = vector.broadcast %429 : f32 to vector<16x16xf32>
    %433 = arith.mulf %432, %431 : vector<16x16xf32>
    %434 = arith.addf %428, %433 : vector<16x16xf32>
    %c68 = arith.constant 68 : index
    %435 = memref.load %arg2[%c68] : memref<98xf32, #tpu.memory_space<smem>>
    %c1_235 = arith.constant 1 : index
    %c2_236 = arith.constant 2 : index
    %c5_237 = arith.constant 5 : index
    %436 = vector.load %arg4[%c1_235, %c2_236, %c5_237] : memref<2x22x22xf32, #tpu.memory_space<vmem>>, vector<1x16x16xf32>
    %437 = vector.shape_cast %436 : vector<1x16x16xf32> to vector<16x16xf32>
    %438 = vector.broadcast %435 : f32 to vector<16x16xf32>
    %439 = arith.mulf %438, %437 : vector<16x16xf32>
    %440 = arith.addf %434, %439 : vector<16x16xf32>
    %c69 = arith.constant 69 : index
    %441 = memref.load %arg2[%c69] : memref<98xf32, #tpu.memory_space<smem>>
    %c1_238 = arith.constant 1 : index
    %c2_239 = arith.constant 2 : index
    %c6_240 = arith.constant 6 : index
    %442 = vector.load %arg4[%c1_238, %c2_239, %c6_240] : memref<2x22x22xf32, #tpu.memory_space<vmem>>, vector<1x16x16xf32>
    %443 = vector.shape_cast %442 : vector<1x16x16xf32> to vector<16x16xf32>
    %444 = vector.broadcast %441 : f32 to vector<16x16xf32>
    %445 = arith.mulf %444, %443 : vector<16x16xf32>
    %446 = arith.addf %440, %445 : vector<16x16xf32>
    %c70 = arith.constant 70 : index
    %447 = memref.load %arg2[%c70] : memref<98xf32, #tpu.memory_space<smem>>
    %c1_241 = arith.constant 1 : index
    %c3_242 = arith.constant 3 : index
    %c0_243 = arith.constant 0 : index
    %448 = vector.load %arg4[%c1_241, %c3_242, %c0_243] : memref<2x22x22xf32, #tpu.memory_space<vmem>>, vector<1x16x16xf32>
    %449 = vector.shape_cast %448 : vector<1x16x16xf32> to vector<16x16xf32>
    %450 = vector.broadcast %447 : f32 to vector<16x16xf32>
    %451 = arith.mulf %450, %449 : vector<16x16xf32>
    %452 = arith.addf %446, %451 : vector<16x16xf32>
    %c71 = arith.constant 71 : index
    %453 = memref.load %arg2[%c71] : memref<98xf32, #tpu.memory_space<smem>>
    %c1_244 = arith.constant 1 : index
    %c3_245 = arith.constant 3 : index
    %c1_246 = arith.constant 1 : index
    %454 = vector.load %arg4[%c1_244, %c3_245, %c1_246] : memref<2x22x22xf32, #tpu.memory_space<vmem>>, vector<1x16x16xf32>
    %455 = vector.shape_cast %454 : vector<1x16x16xf32> to vector<16x16xf32>
    %456 = vector.broadcast %453 : f32 to vector<16x16xf32>
    %457 = arith.mulf %456, %455 : vector<16x16xf32>
    %458 = arith.addf %452, %457 : vector<16x16xf32>
    %c72 = arith.constant 72 : index
    %459 = memref.load %arg2[%c72] : memref<98xf32, #tpu.memory_space<smem>>
    %c1_247 = arith.constant 1 : index
    %c3_248 = arith.constant 3 : index
    %c2_249 = arith.constant 2 : index
    %460 = vector.load %arg4[%c1_247, %c3_248, %c2_249] : memref<2x22x22xf32, #tpu.memory_space<vmem>>, vector<1x16x16xf32>
    %461 = vector.shape_cast %460 : vector<1x16x16xf32> to vector<16x16xf32>
    %462 = vector.broadcast %459 : f32 to vector<16x16xf32>
    %463 = arith.mulf %462, %461 : vector<16x16xf32>
    %464 = arith.addf %458, %463 : vector<16x16xf32>
    %c73 = arith.constant 73 : index
    %465 = memref.load %arg2[%c73] : memref<98xf32, #tpu.memory_space<smem>>
    %c1_250 = arith.constant 1 : index
    %c3_251 = arith.constant 3 : index
    %c3_252 = arith.constant 3 : index
    %466 = vector.load %arg4[%c1_250, %c3_251, %c3_252] : memref<2x22x22xf32, #tpu.memory_space<vmem>>, vector<1x16x16xf32>
    %467 = vector.shape_cast %466 : vector<1x16x16xf32> to vector<16x16xf32>
    %468 = vector.broadcast %465 : f32 to vector<16x16xf32>
    %469 = arith.mulf %468, %467 : vector<16x16xf32>
    %470 = arith.addf %464, %469 : vector<16x16xf32>
    %c74 = arith.constant 74 : index
    %471 = memref.load %arg2[%c74] : memref<98xf32, #tpu.memory_space<smem>>
    %c1_253 = arith.constant 1 : index
    %c3_254 = arith.constant 3 : index
    %c4_255 = arith.constant 4 : index
    %472 = vector.load %arg4[%c1_253, %c3_254, %c4_255] : memref<2x22x22xf32, #tpu.memory_space<vmem>>, vector<1x16x16xf32>
    %473 = vector.shape_cast %472 : vector<1x16x16xf32> to vector<16x16xf32>
    %474 = vector.broadcast %471 : f32 to vector<16x16xf32>
    %475 = arith.mulf %474, %473 : vector<16x16xf32>
    %476 = arith.addf %470, %475 : vector<16x16xf32>
    %c75 = arith.constant 75 : index
    %477 = memref.load %arg2[%c75] : memref<98xf32, #tpu.memory_space<smem>>
    %c1_256 = arith.constant 1 : index
    %c3_257 = arith.constant 3 : index
    %c5_258 = arith.constant 5 : index
    %478 = vector.load %arg4[%c1_256, %c3_257, %c5_258] : memref<2x22x22xf32, #tpu.memory_space<vmem>>, vector<1x16x16xf32>
    %479 = vector.shape_cast %478 : vector<1x16x16xf32> to vector<16x16xf32>
    %480 = vector.broadcast %477 : f32 to vector<16x16xf32>
    %481 = arith.mulf %480, %479 : vector<16x16xf32>
    %482 = arith.addf %476, %481 : vector<16x16xf32>
    %c76 = arith.constant 76 : index
    %483 = memref.load %arg2[%c76] : memref<98xf32, #tpu.memory_space<smem>>
    %c1_259 = arith.constant 1 : index
    %c3_260 = arith.constant 3 : index
    %c6_261 = arith.constant 6 : index
    %484 = vector.load %arg4[%c1_259, %c3_260, %c6_261] : memref<2x22x22xf32, #tpu.memory_space<vmem>>, vector<1x16x16xf32>
    %485 = vector.shape_cast %484 : vector<1x16x16xf32> to vector<16x16xf32>
    %486 = vector.broadcast %483 : f32 to vector<16x16xf32>
    %487 = arith.mulf %486, %485 : vector<16x16xf32>
    %488 = arith.addf %482, %487 : vector<16x16xf32>
    %c77 = arith.constant 77 : index
    %489 = memref.load %arg2[%c77] : memref<98xf32, #tpu.memory_space<smem>>
    %c1_262 = arith.constant 1 : index
    %c4_263 = arith.constant 4 : index
    %c0_264 = arith.constant 0 : index
    %490 = vector.load %arg4[%c1_262, %c4_263, %c0_264] : memref<2x22x22xf32, #tpu.memory_space<vmem>>, vector<1x16x16xf32>
    %491 = vector.shape_cast %490 : vector<1x16x16xf32> to vector<16x16xf32>
    %492 = vector.broadcast %489 : f32 to vector<16x16xf32>
    %493 = arith.mulf %492, %491 : vector<16x16xf32>
    %494 = arith.addf %488, %493 : vector<16x16xf32>
    %c78 = arith.constant 78 : index
    %495 = memref.load %arg2[%c78] : memref<98xf32, #tpu.memory_space<smem>>
    %c1_265 = arith.constant 1 : index
    %c4_266 = arith.constant 4 : index
    %c1_267 = arith.constant 1 : index
    %496 = vector.load %arg4[%c1_265, %c4_266, %c1_267] : memref<2x22x22xf32, #tpu.memory_space<vmem>>, vector<1x16x16xf32>
    %497 = vector.shape_cast %496 : vector<1x16x16xf32> to vector<16x16xf32>
    %498 = vector.broadcast %495 : f32 to vector<16x16xf32>
    %499 = arith.mulf %498, %497 : vector<16x16xf32>
    %500 = arith.addf %494, %499 : vector<16x16xf32>
    %c79 = arith.constant 79 : index
    %501 = memref.load %arg2[%c79] : memref<98xf32, #tpu.memory_space<smem>>
    %c1_268 = arith.constant 1 : index
    %c4_269 = arith.constant 4 : index
    %c2_270 = arith.constant 2 : index
    %502 = vector.load %arg4[%c1_268, %c4_269, %c2_270] : memref<2x22x22xf32, #tpu.memory_space<vmem>>, vector<1x16x16xf32>
    %503 = vector.shape_cast %502 : vector<1x16x16xf32> to vector<16x16xf32>
    %504 = vector.broadcast %501 : f32 to vector<16x16xf32>
    %505 = arith.mulf %504, %503 : vector<16x16xf32>
    %506 = arith.addf %500, %505 : vector<16x16xf32>
    %c80 = arith.constant 80 : index
    %507 = memref.load %arg2[%c80] : memref<98xf32, #tpu.memory_space<smem>>
    %c1_271 = arith.constant 1 : index
    %c4_272 = arith.constant 4 : index
    %c3_273 = arith.constant 3 : index
    %508 = vector.load %arg4[%c1_271, %c4_272, %c3_273] : memref<2x22x22xf32, #tpu.memory_space<vmem>>, vector<1x16x16xf32>
    %509 = vector.shape_cast %508 : vector<1x16x16xf32> to vector<16x16xf32>
    %510 = vector.broadcast %507 : f32 to vector<16x16xf32>
    %511 = arith.mulf %510, %509 : vector<16x16xf32>
    %512 = arith.addf %506, %511 : vector<16x16xf32>
    %c81 = arith.constant 81 : index
    %513 = memref.load %arg2[%c81] : memref<98xf32, #tpu.memory_space<smem>>
    %c1_274 = arith.constant 1 : index
    %c4_275 = arith.constant 4 : index
    %c4_276 = arith.constant 4 : index
    %514 = vector.load %arg4[%c1_274, %c4_275, %c4_276] : memref<2x22x22xf32, #tpu.memory_space<vmem>>, vector<1x16x16xf32>
    %515 = vector.shape_cast %514 : vector<1x16x16xf32> to vector<16x16xf32>
    %516 = vector.broadcast %513 : f32 to vector<16x16xf32>
    %517 = arith.mulf %516, %515 : vector<16x16xf32>
    %518 = arith.addf %512, %517 : vector<16x16xf32>
    %c82 = arith.constant 82 : index
    %519 = memref.load %arg2[%c82] : memref<98xf32, #tpu.memory_space<smem>>
    %c1_277 = arith.constant 1 : index
    %c4_278 = arith.constant 4 : index
    %c5_279 = arith.constant 5 : index
    %520 = vector.load %arg4[%c1_277, %c4_278, %c5_279] : memref<2x22x22xf32, #tpu.memory_space<vmem>>, vector<1x16x16xf32>
    %521 = vector.shape_cast %520 : vector<1x16x16xf32> to vector<16x16xf32>
    %522 = vector.broadcast %519 : f32 to vector<16x16xf32>
    %523 = arith.mulf %522, %521 : vector<16x16xf32>
    %524 = arith.addf %518, %523 : vector<16x16xf32>
    %c83 = arith.constant 83 : index
    %525 = memref.load %arg2[%c83] : memref<98xf32, #tpu.memory_space<smem>>
    %c1_280 = arith.constant 1 : index
    %c4_281 = arith.constant 4 : index
    %c6_282 = arith.constant 6 : index
    %526 = vector.load %arg4[%c1_280, %c4_281, %c6_282] : memref<2x22x22xf32, #tpu.memory_space<vmem>>, vector<1x16x16xf32>
    %527 = vector.shape_cast %526 : vector<1x16x16xf32> to vector<16x16xf32>
    %528 = vector.broadcast %525 : f32 to vector<16x16xf32>
    %529 = arith.mulf %528, %527 : vector<16x16xf32>
    %530 = arith.addf %524, %529 : vector<16x16xf32>
    %c84 = arith.constant 84 : index
    %531 = memref.load %arg2[%c84] : memref<98xf32, #tpu.memory_space<smem>>
    %c1_283 = arith.constant 1 : index
    %c5_284 = arith.constant 5 : index
    %c0_285 = arith.constant 0 : index
    %532 = vector.load %arg4[%c1_283, %c5_284, %c0_285] : memref<2x22x22xf32, #tpu.memory_space<vmem>>, vector<1x16x16xf32>
    %533 = vector.shape_cast %532 : vector<1x16x16xf32> to vector<16x16xf32>
    %534 = vector.broadcast %531 : f32 to vector<16x16xf32>
    %535 = arith.mulf %534, %533 : vector<16x16xf32>
    %536 = arith.addf %530, %535 : vector<16x16xf32>
    %c85 = arith.constant 85 : index
    %537 = memref.load %arg2[%c85] : memref<98xf32, #tpu.memory_space<smem>>
    %c1_286 = arith.constant 1 : index
    %c5_287 = arith.constant 5 : index
    %c1_288 = arith.constant 1 : index
    %538 = vector.load %arg4[%c1_286, %c5_287, %c1_288] : memref<2x22x22xf32, #tpu.memory_space<vmem>>, vector<1x16x16xf32>
    %539 = vector.shape_cast %538 : vector<1x16x16xf32> to vector<16x16xf32>
    %540 = vector.broadcast %537 : f32 to vector<16x16xf32>
    %541 = arith.mulf %540, %539 : vector<16x16xf32>
    %542 = arith.addf %536, %541 : vector<16x16xf32>
    %c86 = arith.constant 86 : index
    %543 = memref.load %arg2[%c86] : memref<98xf32, #tpu.memory_space<smem>>
    %c1_289 = arith.constant 1 : index
    %c5_290 = arith.constant 5 : index
    %c2_291 = arith.constant 2 : index
    %544 = vector.load %arg4[%c1_289, %c5_290, %c2_291] : memref<2x22x22xf32, #tpu.memory_space<vmem>>, vector<1x16x16xf32>
    %545 = vector.shape_cast %544 : vector<1x16x16xf32> to vector<16x16xf32>
    %546 = vector.broadcast %543 : f32 to vector<16x16xf32>
    %547 = arith.mulf %546, %545 : vector<16x16xf32>
    %548 = arith.addf %542, %547 : vector<16x16xf32>
    %c87 = arith.constant 87 : index
    %549 = memref.load %arg2[%c87] : memref<98xf32, #tpu.memory_space<smem>>
    %c1_292 = arith.constant 1 : index
    %c5_293 = arith.constant 5 : index
    %c3_294 = arith.constant 3 : index
    %550 = vector.load %arg4[%c1_292, %c5_293, %c3_294] : memref<2x22x22xf32, #tpu.memory_space<vmem>>, vector<1x16x16xf32>
    %551 = vector.shape_cast %550 : vector<1x16x16xf32> to vector<16x16xf32>
    %552 = vector.broadcast %549 : f32 to vector<16x16xf32>
    %553 = arith.mulf %552, %551 : vector<16x16xf32>
    %554 = arith.addf %548, %553 : vector<16x16xf32>
    %c88 = arith.constant 88 : index
    %555 = memref.load %arg2[%c88] : memref<98xf32, #tpu.memory_space<smem>>
    %c1_295 = arith.constant 1 : index
    %c5_296 = arith.constant 5 : index
    %c4_297 = arith.constant 4 : index
    %556 = vector.load %arg4[%c1_295, %c5_296, %c4_297] : memref<2x22x22xf32, #tpu.memory_space<vmem>>, vector<1x16x16xf32>
    %557 = vector.shape_cast %556 : vector<1x16x16xf32> to vector<16x16xf32>
    %558 = vector.broadcast %555 : f32 to vector<16x16xf32>
    %559 = arith.mulf %558, %557 : vector<16x16xf32>
    %560 = arith.addf %554, %559 : vector<16x16xf32>
    %c89 = arith.constant 89 : index
    %561 = memref.load %arg2[%c89] : memref<98xf32, #tpu.memory_space<smem>>
    %c1_298 = arith.constant 1 : index
    %c5_299 = arith.constant 5 : index
    %c5_300 = arith.constant 5 : index
    %562 = vector.load %arg4[%c1_298, %c5_299, %c5_300] : memref<2x22x22xf32, #tpu.memory_space<vmem>>, vector<1x16x16xf32>
    %563 = vector.shape_cast %562 : vector<1x16x16xf32> to vector<16x16xf32>
    %564 = vector.broadcast %561 : f32 to vector<16x16xf32>
    %565 = arith.mulf %564, %563 : vector<16x16xf32>
    %566 = arith.addf %560, %565 : vector<16x16xf32>
    %c90 = arith.constant 90 : index
    %567 = memref.load %arg2[%c90] : memref<98xf32, #tpu.memory_space<smem>>
    %c1_301 = arith.constant 1 : index
    %c5_302 = arith.constant 5 : index
    %c6_303 = arith.constant 6 : index
    %568 = vector.load %arg4[%c1_301, %c5_302, %c6_303] : memref<2x22x22xf32, #tpu.memory_space<vmem>>, vector<1x16x16xf32>
    %569 = vector.shape_cast %568 : vector<1x16x16xf32> to vector<16x16xf32>
    %570 = vector.broadcast %567 : f32 to vector<16x16xf32>
    %571 = arith.mulf %570, %569 : vector<16x16xf32>
    %572 = arith.addf %566, %571 : vector<16x16xf32>
    %c91 = arith.constant 91 : index
    %573 = memref.load %arg2[%c91] : memref<98xf32, #tpu.memory_space<smem>>
    %c1_304 = arith.constant 1 : index
    %c6_305 = arith.constant 6 : index
    %c0_306 = arith.constant 0 : index
    %574 = vector.load %arg4[%c1_304, %c6_305, %c0_306] : memref<2x22x22xf32, #tpu.memory_space<vmem>>, vector<1x16x16xf32>
    %575 = vector.shape_cast %574 : vector<1x16x16xf32> to vector<16x16xf32>
    %576 = vector.broadcast %573 : f32 to vector<16x16xf32>
    %577 = arith.mulf %576, %575 : vector<16x16xf32>
    %578 = arith.addf %572, %577 : vector<16x16xf32>
    %c92 = arith.constant 92 : index
    %579 = memref.load %arg2[%c92] : memref<98xf32, #tpu.memory_space<smem>>
    %c1_307 = arith.constant 1 : index
    %c6_308 = arith.constant 6 : index
    %c1_309 = arith.constant 1 : index
    %580 = vector.load %arg4[%c1_307, %c6_308, %c1_309] : memref<2x22x22xf32, #tpu.memory_space<vmem>>, vector<1x16x16xf32>
    %581 = vector.shape_cast %580 : vector<1x16x16xf32> to vector<16x16xf32>
    %582 = vector.broadcast %579 : f32 to vector<16x16xf32>
    %583 = arith.mulf %582, %581 : vector<16x16xf32>
    %584 = arith.addf %578, %583 : vector<16x16xf32>
    %c93 = arith.constant 93 : index
    %585 = memref.load %arg2[%c93] : memref<98xf32, #tpu.memory_space<smem>>
    %c1_310 = arith.constant 1 : index
    %c6_311 = arith.constant 6 : index
    %c2_312 = arith.constant 2 : index
    %586 = vector.load %arg4[%c1_310, %c6_311, %c2_312] : memref<2x22x22xf32, #tpu.memory_space<vmem>>, vector<1x16x16xf32>
    %587 = vector.shape_cast %586 : vector<1x16x16xf32> to vector<16x16xf32>
    %588 = vector.broadcast %585 : f32 to vector<16x16xf32>
    %589 = arith.mulf %588, %587 : vector<16x16xf32>
    %590 = arith.addf %584, %589 : vector<16x16xf32>
    %c94 = arith.constant 94 : index
    %591 = memref.load %arg2[%c94] : memref<98xf32, #tpu.memory_space<smem>>
    %c1_313 = arith.constant 1 : index
    %c6_314 = arith.constant 6 : index
    %c3_315 = arith.constant 3 : index
    %592 = vector.load %arg4[%c1_313, %c6_314, %c3_315] : memref<2x22x22xf32, #tpu.memory_space<vmem>>, vector<1x16x16xf32>
    %593 = vector.shape_cast %592 : vector<1x16x16xf32> to vector<16x16xf32>
    %594 = vector.broadcast %591 : f32 to vector<16x16xf32>
    %595 = arith.mulf %594, %593 : vector<16x16xf32>
    %596 = arith.addf %590, %595 : vector<16x16xf32>
    %c95 = arith.constant 95 : index
    %597 = memref.load %arg2[%c95] : memref<98xf32, #tpu.memory_space<smem>>
    %c1_316 = arith.constant 1 : index
    %c6_317 = arith.constant 6 : index
    %c4_318 = arith.constant 4 : index
    %598 = vector.load %arg4[%c1_316, %c6_317, %c4_318] : memref<2x22x22xf32, #tpu.memory_space<vmem>>, vector<1x16x16xf32>
    %599 = vector.shape_cast %598 : vector<1x16x16xf32> to vector<16x16xf32>
    %600 = vector.broadcast %597 : f32 to vector<16x16xf32>
    %601 = arith.mulf %600, %599 : vector<16x16xf32>
    %602 = arith.addf %596, %601 : vector<16x16xf32>
    %c96 = arith.constant 96 : index
    %603 = memref.load %arg2[%c96] : memref<98xf32, #tpu.memory_space<smem>>
    %c1_319 = arith.constant 1 : index
    %c6_320 = arith.constant 6 : index
    %c5_321 = arith.constant 5 : index
    %604 = vector.load %arg4[%c1_319, %c6_320, %c5_321] : memref<2x22x22xf32, #tpu.memory_space<vmem>>, vector<1x16x16xf32>
    %605 = vector.shape_cast %604 : vector<1x16x16xf32> to vector<16x16xf32>
    %606 = vector.broadcast %603 : f32 to vector<16x16xf32>
    %607 = arith.mulf %606, %605 : vector<16x16xf32>
    %608 = arith.addf %602, %607 : vector<16x16xf32>
    %c97 = arith.constant 97 : index
    %609 = memref.load %arg2[%c97] : memref<98xf32, #tpu.memory_space<smem>>
    %c1_322 = arith.constant 1 : index
    %c6_323 = arith.constant 6 : index
    %c6_324 = arith.constant 6 : index
    %610 = vector.load %arg4[%c1_322, %c6_323, %c6_324] : memref<2x22x22xf32, #tpu.memory_space<vmem>>, vector<1x16x16xf32>
    %611 = vector.shape_cast %610 : vector<1x16x16xf32> to vector<16x16xf32>
    %612 = vector.broadcast %609 : f32 to vector<16x16xf32>
    %613 = arith.mulf %612, %611 : vector<16x16xf32>
    %614 = arith.addf %608, %613 : vector<16x16xf32>
    %cst_325 = arith.constant 0.000000e+00 : f32
    %615 = vector.broadcast %cst_325 : f32 to vector<16x16xf32>
    %616 = arith.subf %615, %614 : vector<16x16xf32>
    %617 = math.exp %616 : vector<16x16xf32>
    %cst_326 = arith.constant 1.000000e+00 : f32
    %618 = vector.broadcast %cst_326 : f32 to vector<16x16xf32>
    %619 = arith.addf %618, %617 : vector<16x16xf32>
    %cst_327 = arith.constant 1.000000e+00 : f32
    %620 = vector.broadcast %cst_327 : f32 to vector<16x16xf32>
    %621 = arith.divf %620, %619 : vector<16x16xf32>
    %c0_328 = arith.constant 0 : index
    %c0_329 = arith.constant 0 : index
    %c0_330 = arith.constant 0 : index
    %c0_331 = arith.constant 0 : index
    %622 = vector.load %arg3[%c0_328, %c0_329, %c0_330, %c0_331] : memref<1x1x16x16xf32, #tpu.memory_space<vmem>>, vector<1x1x16x16xf32>
    %623 = vector.shape_cast %622 : vector<1x1x16x16xf32> to vector<16x16xf32>
    %624 = vector.shape_cast %621 : vector<16x16xf32> to vector<1x1x16x16xf32>
    tpu.vector_store %arg3[%c0_328, %c0_329, %c0_330, %c0_331], %624 {strides = array<i32>} : memref<1x1x16x16xf32, #tpu.memory_space<vmem>>, vector<1x1x16x16xf32>,
    return
  }
  func.func @transform_0(%arg0: i32) -> (i32, i32, i32, i32) {
    %c0_i32 = arith.constant 0 : i32
    %c0_i32_0 = arith.constant 0 : i32
    %c0_i32_1 = arith.constant 0 : i32
    %c0_i32_2 = arith.constant 0 : i32
    return %arg0, %c0_i32, %c0_i32_0, %c0_i32_1 : i32, i32, i32, i32
  }
  func.func @transform_1(%arg0: i32) -> i32 {
    %c0_i32 = arith.constant 0 : i32
    %c0_i32_0 = arith.constant 0 : i32
    return %c0_i32 : i32
  }
  func.func @transform_2(%arg0: i32) -> (i32, i32, i32, i32) {
    %c0_i32 = arith.constant 0 : i32
    %c0_i32_0 = arith.constant 0 : i32
    %c0_i32_1 = arith.constant 0 : i32
    %c0_i32_2 = arith.constant 0 : i32
    return %arg0, %c0_i32, %c0_i32_0, %c0_i32_1 : i32, i32, i32, i32
  }
}

</mosaic_0001>

<bundles_post_ra>
// kernel: tpu_custom_call.1
= control target key start
LH: loop header
LB: loop body
LE: loop exit
PB: predicated region body
PF: predicated region fallthrough
CT: control target
= control target key end

     0   :  { %7 = vsyncpa [#allocation4], 0  ;;  %s2780_s0 = inlined_call_operand.hbm [shape: f32[2,4,16,16], index: 0, kind: input, shape index: {}]   ;;  %s2781_s1 = inlined_call_operand.vmem [shape: f32[98], index: 1, kind: input, shape index: {}]   ;;  %s2782_s2 = inlined_call_operand.hbm [shape: f32[2,1,16,16], index: 2, kind: output, shape index: {}]  }
   0x1   :  { %9 = vsyncpa [#allocation4 + $0x1], 0 }
   0x2   :  { %10 = vsyncpa [#allocation6], 0 }
   0x3   :  { %11 = vsyncpa [#allocation5], 0 }
   0x4   :  { %13 = vsyncpa [#allocation5 + $0x1], 0  ;;  %s1978_s9 = smov 0   ;;  %s1980_s10 = smov 0  }
   0x5   :  { %s1982_s11 = smov 0   ;;  %s1984_s12 = smov 0  }
   0x6 LB: > { %s1999_s13 = sadd.s32 4294967295, %s1946_s12   ;;  %s1633_s14 = sadd.s32 4294967294, %s1946_s12   ;;  %s1946_s12 = sphi %s1984_s12, %s2802_s12   ;;  %s1942_s11 = sphi %s1982_s11, %s2801_s11   ;;  %s1938_s10 = sphi %s1980_s10, %s2800_s10   ;;  %s1934_s9 = sphi %s1978_s9, %s2799_s9  }
   0x7   : > { %s2003_s15 = sadd.s32 1, %s1946_s12   ;;  %s26_s16 = sadd.s32 1, %s1942_s11 }
   0x8   : > { %s23_s17 = ssub.s32 %s1946_s12, %s2003_s15  ;;  %p33_p0 = scmp.ne.s32.totalorder %s1942_s11, %s1938_s10 }
   0x9   : > { %p24_p1 = scmp.eq.s32.totalorder %s23_s17, 0  ;;  %p34_p2 = scmp.eq.s32.totalorder %s1946_s12, 0 }
   0xa   : > { %p39_p3 = scmp.ne.s32.totalorder %s1938_s10, %s1934_s9  ;;  %p2784_p4 = scmp.eq.s32.totalorder %s1999_s13, 0 }
   0xb   : > { %s2015_s18 = scalar_select %p24_p1, %s1942_s11, %s26_s16  }
   0xc   : > { %p2017_p5 = por %p34_p2, %p33_p0  ;;  %p2023_p6 = por %p2784_p4, %p39_p3 }
   0xd   : > { %p84_p7 = scmp.eq.s32.totalorder %s1999_s13, 1  ;;  %p90_p8 = scmp.eq.s32.totalorder %s1633_s14, 1 }
   0xe   : > { %s2787_s20 = scalar_select %p2023_p6, 1, 0 }
   0xf   : > { %p1634_p9 = scmp.ge.s32.totalorder %s1946_s12, 1  ;;  %p97_p10 = scmp.lt.s32.totalorder %s1946_s12, 3 }
  0x10   : > { %p2030_p11 = por %p84_p7, %p33_p0  ;;  %p2034_p12 = por %p90_p8, %p39_p3 }
  0x11   : > { %p2038_p13 = pnand %p1634_p9, %p97_p10  ;;  %s110_s26 = sshll.u32 %s2781_s1, 4  ;;  %s111_s26 = int_to_ptr.vmem [resolvable:$true] %s110_s26 }
  0x12   : > { %s2788_s21 = scalar_select %p2030_p11, 1, 0 }
  0x13   : > { %s2789_s22 = scalar_select %p2034_p12, 1, 0 }
  0x14   : > { %p1762_p1 = pneg %p2038_p13  ;;  %p1775_p2 = scmp.lt.s32.totalorder %s1946_s12, 2 }
  0x15   : > { %s121_s28 = sand.u32 1, %s1942_s11   ;;  %s1831_s3 = scalar_lea.vmem %s111_s26, 16 }
  0x16   : > { %p2051_p7 = pnand %p1762_p1, %p2784_p4  ;;  %p2058_p3 = pnand %p1775_p2, %p2017_p5 }
  0x17   : > { %s1637_s30 = sshll.u32 %s121_s28, 6  ;;  %p1832_p8 = scmp.ne.s32.totalorder %s111_s26, %s1831_s3 }
  0x18   : > { %p1833_p9 = pneg %p2051_p7  ;;  %p1839_p12 = scmp.lt.s32.totalorder %s111_s26, %s111_s26 }
  0x19   : > { %p1840_p11 = scmp.lt.s32.totalorder %s1831_s3, %s1831_s3 }
  0x1a   : > { %p1834_p10 = pnand %p1833_p9, %p1832_p8 }
  0x1b   : > { %p1841_p1 = por %p1840_p11, %p1839_p12 }
  0x1c   : > { %p1835_p0 = pneg %p1834_p10 }
  0x1e   : > { %p1842_p4 = pnand %p1841_p1, %p1835_p0 }
  0x20   : > { %1845 = shalt.err (!%p1842_p4)
}
  0x21   : > { %s1948_s4 = smov [#allocation7]   ;;  %s1752_s5 = sshll.u32 %s1946_s12, 10 }
  0x22   : > { %1765 = dma.vmem_to_smem (!%p2051_p7), %s111_s26, 16, %s1948_s4, [#allocation6]  }
  0x23   : > { %s125_s6 = scalar_lea.vmem [#allocation3], %s1637_s30  ;;  %s2070_s16 = scalar_lea.hbm %s2780_s0, %s1752_s5 }
  0x24   : > { %s132_s7 = sshll.u32 %s125_s6, 4  ;;  %s2074_s17 = scalar_lea.sflag [#allocation4], %s121_s28  ;;  %s2072_s7 = int_to_ptr.vmem [resolvable:$true] %s132_s7 }
  0x25   : > { %s1846_s19 = scalar_lea.hbm %s2070_s16, 1024  ;;  %p1848_p5 = pneg %p2058_p3 }
  0x26   : > { %p1847_p4 = scmp.ne.s32.totalorder %s2070_s16, %s1846_s19  ;;  %s1851_s26 = scalar_lea.hbm %s2780_s0, 2048 }
  0x27   : > { %p1852_p0 = scmp.lt.u32.totalorder %s2070_s16, %s2780_s0  ;;  %p1853_p2 = scmp.lt.u32.totalorder %s1851_s26, %s1846_s19 }
  0x28   : > { %p1849_p11 = pnand %p1848_p5, %p1847_p4  ;;  %p1855_p8 = scmp.lt.u32.totalorder %s1846_s19, %s2070_s16 }
  0x29   : > { %p1854_p7 = por %p1853_p2, %p1852_p0 }
  0x2a   : > { %p1850_p12 = pneg %p1849_p11 }
  0x2b   : > { %p1856_p9 = por %p1855_p8, %p1854_p7 }
  0x2d   : > { %p1857_p10 = pnand %p1856_p9, %p1850_p12 }
  0x2f   : > { %1860 = shalt.err (!%p1857_p10)
}
  0x30   : > { %s1861_s28 = scalar_lea.vmem %s2072_s7, 1024  ;;  %s1949_s3 = smov [#allocation3]  }
  0x31   : > { %p1862_p1 = scmp.ne.s32.totalorder %s2072_s7, %s1861_s28  ;;  %s1866_s4 = sshll.u32 %s1949_s3, 4  ;;  %s1867_s4 = int_to_ptr.vmem [resolvable:$false] %s1866_s4 }
  0x32   : > { %s1868_s5 = scalar_lea.vmem %s1867_s4, 2048  ;;  %p1869_p6 = scmp.lt.s32.totalorder %s2072_s7, %s1867_s4 }
  0x33   : > { %p1864_p4 = pnand %p1862_p1, %p1848_p5  ;;  %p1870_p0 = scmp.lt.s32.totalorder %s1868_s5, %s1861_s28 }
  0x35   : > { %p1865_p11 = pneg %p1864_p4  ;;  %p1871_p2 = por %p1870_p0, %p1869_p6 }
  0x37   : > { %p1872_p7 = pnand %p1871_p2, %p1865_p11 }
  0x39   : > { %1875 = shalt.err (!%p1872_p7)
}
  0x3a   : > { %s1950_s6 = smov 128   ;;  %s1951_s8 = smov 8  }
  0x3b   : > { %1769 = dma.hbm_to_vmem [thread:$0]  (!%p2058_p3), %s2070_s16, 1024, %s2072_s7, %s2074_s17, %s1950_s6, %s1950_s6, %s1951_s8  }
  0x3c   : > { %144 = sbr.rel (%p2038_p13) target bundleno = 704 (0x2c0), region = 28  ;;  %s2105_s14 = sand.u32 (!%p2038_p13), 1, %s1938_s10  }
  0x3d   : > { %s1641_s19 = sshll.u32 (!%p2038_p13), %s2105_s14, 6  ;;  %s147_s24 = scalar_lea.sflag (!%p2038_p13), [#allocation4], %s2105_s14 }
  0x3e   : > { %s150_s25 = scalar_lea.vmem (!%p2038_p13), [#allocation3], %s1641_s19  ;;  %p2793_p6 = scmp.ne.s32.totalorder (!%p2038_p13), %s2787_s20, 0 }
  0x43   : > { %1921 = dma.done.wait (%p2793_p6), %s147_s24, 1024  }
  0x44   : > { %1923 = vsyncadd (%p2793_p6), %s147_s24, 4294966272  ;;  %p2794_p5 = scmp.eq.s32.totalorder %s1999_s13, 0 }
  0x46   : > { %1925 = dma.done.wait (%p2794_p5), [#allocation6], 16   ;;  %p2795_p3 = pmov %p2794_p5 }
  0x48   : > { %1927 = vsyncadd (%p2795_p3), [#allocation6], 4294967280 }
  0x49   : > { %159 = sfence }
  0x4a   : > { %v176_v0 = vld [vmem:[%s150_s25] sm:$0xff]  ;;  %v1644_v1 = vld [vmem:[%s150_s25 + $0x10] sm:$0xff]  ;;  %vm201_vm0 = vcmask 179200   ;;  %v177_v4 = vld [vmem:[%s150_s25 + $0x8] sm:$0xff]  ;;  %v1952_v6 = vmov 0.0   ;;  %vm204_vm1 = vcmask 177152  }
  0x4b   : > { %v1646_v2 = vld [vmem:[%s150_s25 + $0x20] sm:$0xff]  ;;  %v181_v3 = vadd.f32 %v1644_v1, %v176_v0  ;;  %v1645_v5 = vld [vmem:[%s150_s25 + $0x18] sm:$0xff]  ;;  %202 = vst.msk [vmem:[#allocation2] sm:$0xff] %vm201_vm0, %v1952_v6  ;;  %203 = vst.msk [vmem:[#allocation2 + $0x8] sm:$0xff] %vm201_vm0, %v1952_v6  ;;  %v183_v7 = vmax.f32 %v176_v0, %v1644_v1  ;;  %s1953_s20 = smov 3   ;;  %vm217_vm2 = vcmask 154648  }
  0x4c   : > { %206 = vst.msk [vmem:[#allocation2 + $0x18] sm:$0xff] %vm201_vm0, %v1952_v6  ;;  %207 = vst.msk [vmem:[#allocation2 + $0x20] sm:$0xff] %vm201_vm0, %v1952_v6  ;;  %v1648_v8 = vld [vmem:[%s150_s25 + $0x30] sm:$0xff]  ;;  %v182_v9 = vadd.f32 %v1645_v5, %v177_v4  ;;  %v1647_v10 = vld [vmem:[%s150_s25 + $0x28] sm:$0xff]  ;;  %v184_v11 = vmax.f32 %v177_v4, %v1645_v5  ;;  %s1650_s23 = sld [smem:[#allocation7 + $0x1]]  ;;  %s1651_s29 = sld [smem:[#allocation7 + $0x2]] }
  0x4d   : > { %v188_v12 = vadd.f32 %v1646_v2, %v181_v3  ;;  %v1649_v13 = vld [vmem:[%s150_s25 + $0x38] sm:$0xff]  ;;  %v190_v14 = vmax.f32 %v183_v7, %v1646_v2  ;;  %205 = vst.msk [vmem:[#allocation2 + $0x10] sm:$0x3f] %vm204_vm1, %v1952_v6  ;;  %208 = vst.msk [vmem:[#allocation2 + $0x28] sm:$0x3f] %vm204_vm1, %v1952_v6  ;;  %s1652_s7 = sld [smem:[#allocation7 + $0x3]] }
  0x4e   : > { %v189_v15 = vadd.f32 %v1647_v10, %v182_v9  ;;  %v191_v16 = vmax.f32 %v184_v11, %v1647_v10  ;;  %s1653_s16 = sld [smem:[#allocation7 + $0x4]]  ;;  %s1954_s17 = smov 127   ;;  %vm1531_vm3 = vcmask 130048  }
  0x4f   : > { %v195_v17 = vadd.f32 %v1648_v8, %v188_v12  ;;  %v197_v18 = vmax.f32 %v190_v14, %v1648_v8  ;;  %s1654_s26 = sld [smem:[#allocation7 + $0x5]]  ;;  %s1955_s27 = smov 126  }
  0x50   : > { %v196_v19 = vadd.f32 %v1649_v13, %v189_v15  ;;  %v198_v21 = vmax.f32 %v191_v16, %v1649_v13  ;;  %s1655_s30 = sld [smem:[#allocation7 + $0x6]]  ;;  %s1956_s28 = smov 125  }
  0x51   : > { %v199_v20 = vmul.f32 0.25, %v195_v17  ;;  %222 = vrot.lane.b32.xlu1 %v197_v18, %s1953_s20  ;;  %s1657_s3 = sld [smem:[#allocation7 + $0x8]]  ;;  %s1957_s4 = smov 124  }
  0x52   : > { %v200_v22 = vmul.f32 0.25, %v196_v19  ;;  %v240_v27 = vstv %s1650_s23  ;;  %v254_v30 = vstv %s1651_s29  ;;  %s1658_s5 = sld [smem:[#allocation7 + $0x9]]  ;;  %s1958_s6 = smov 123  }
  0x53   : > { %211 = vrot.lane.b32.xlu0 %v199_v20, %s1953_s20  ;;  %v268_v34 = vstv %s1652_s7  ;;  %s1659_s8 = sld [smem:[#allocation7 + $0xa]]  ;;  %s1959_s19 = smov 122  }
  0x54   : > { %v282_v37 = vstv %s1653_s16  ;;  %s1660_s24 = sld [smem:[#allocation7 + $0xb]]  ;;  %s1661_s25 = sld [smem:[#allocation7 + $0xc]] }
  0x55   : > { %224 = vrot.lane.b32.xlu1 %v198_v21, %s1953_s20  ;;  %v296_v40 = vstv %s1654_s26  ;;  %s1664_s23 = sld [smem:[#allocation7 + $0xf]]  ;;  %s1665_s29 = sld [smem:[#allocation7 + $0x10]] }
  0x56   : > { %v310_v43 = vstv %s1655_s30  ;;  %s1666_s7 = sld [smem:[#allocation7 + $0x11]]  ;;  %s1667_s16 = sld [smem:[#allocation7 + $0x12]] }
  0x57   : > { %213 = vrot.lane.b32.xlu0 %v200_v22, %s1953_s20  ;;  %v332_v47 = vstv %s1657_s3  ;;  %s1662_s20 = sld [smem:[#allocation7 + $0xd]]  ;;  %s1668_s26 = sld [smem:[#allocation7 + $0x13]] }
  0x58   : > { %v346_v51 = vstv %s1658_s5  ;;  %s1669_s30 = sld [smem:[#allocation7 + $0x14]]  ;;  %s1671_s3 = sld [smem:[#allocation7 + $0x16]] }
  0x59   : > { %v360_v54 = vstv %s1659_s8  ;;  %s1672_s5 = sld [smem:[#allocation7 + $0x17]]  ;;  %s1673_s8 = sld [smem:[#allocation7 + $0x18]] }
  0x5a   : > { %v374_v57 = vstv %s1660_s24  ;;  %v388_v60 = vstv %s1661_s25  ;;  %s1674_s24 = sld [smem:[#allocation7 + $0x19]]  ;;  %s1675_s25 = sld [smem:[#allocation7 + $0x1a]] }
  0x5b   : > { %v424_v3 = vstv %s1664_s23  ;;  %v438_v7 = vstv %s1665_s29  ;;  %s1678_s23 = sld [smem:[#allocation7 + $0x1d]]  ;;  %s1679_s29 = sld [smem:[#allocation7 + $0x1e]] }
  0x5c   : > { %v452_v10 = vstv %s1666_s7  ;;  %v466_v13 = vstv %s1667_s16  ;;  %s1680_s7 = sld [smem:[#allocation7 + $0x1f]]  ;;  %s1681_s16 = sld [smem:[#allocation7 + $0x20]] }
  0x5d   : > { %v402_v63 = vstv %s1662_s20  ;;  %v480_v16 = vstv %s1668_s26  ;;  %s1676_s20 = sld [smem:[#allocation7 + $0x1b]]  ;;  %s1682_s26 = sld [smem:[#allocation7 + $0x21]] }
  0x5e   : > { %v494_v19 = vstv %s1669_s30  ;;  %s1683_s30 = sld [smem:[#allocation7 + $0x22]]  ;;  %p2796_p12 = scmp.ne.s32.totalorder %s2788_s21, 0 }
  0xc3   : > { %v223_v23 = vpop.permute.xlu1 %222 }
  0xc4   : > { %229 = vst.msk [vmem:[#allocation2 + $0x1b] sm:$0xff] %vm217_vm2, %v223_v23  ;;  %v516_v23 = vstv %s1671_s3  ;;  %s2245_s3 = sld [smem:[#allocation7 + $0x24]] }
  0xc5   : > { %v212_v24 = vpop.permute.xlu0 %211 }
  0xc6   : > { %218 = vst.msk [vmem:[#allocation2 + $0x3] sm:$0xff] %vm217_vm2, %v212_v24 }
  0xc7   : > { %v225_v25 = vpop.permute.xlu1 %224 }
  0xc8   : > { %230 = vst.msk [vmem:[#allocation2 + $0x23] sm:$0xff] %vm217_vm2, %v225_v25 }
  0xc9   : > { %v214_v26 = vpop.permute.xlu0 %213 }
  0xca   : > { %219 = vst.msk [vmem:[#allocation2 + $0xb] sm:$0xff] %vm217_vm2, %v214_v26 }
  0xcd   : > { %v2117_v28 = vld [vmem:[#allocation2] sm:$0xff] }
  0xce   : > { %v241_v29 = vmul.f32 %v240_v27, %v2117_v28  ;;  %v255_v32 = vmul.f32 %v254_v30, %v2117_v28  ;;  %v269_v35 = vmul.f32 %v268_v34, %v2117_v28  ;;  %v283_v38 = vmul.f32 %v282_v37, %v2117_v28  ;;  %v2141_v46 = vld [vmem:[#allocation2 + $0x1] sm:$0xff] }
  0xcf   : > { %v297_v41 = vmul.f32 %v296_v40, %v2117_v28  ;;  %v311_v44 = vmul.f32 %v310_v43, %v2117_v28  ;;  %v333_v48 = vmul.f32 %v332_v47, %v2141_v46  ;;  %v347_v52 = vmul.f32 %v346_v51, %v2141_v46  ;;  %v2169_v2 = vld [vmem:[#allocation2 + $0x2] sm:$0xff] }
  0xd0   : > { %245 = vrot.lane.b32.xlu0 %v241_v29, %s1954_s17  ;;  %v361_v55 = vmul.f32 %v360_v54, %v2141_v46  ;;  %v375_v58 = vmul.f32 %v374_v57, %v2141_v46  ;;  %v389_v61 = vmul.f32 %v388_v60, %v2141_v46  ;;  %v403_v0 = vmul.f32 %v402_v63, %v2141_v46  ;;  %v2197_v22 = vld [vmem:[#allocation2 + $0x3] sm:$0xff] }
  0xd1   : > { %v2121_v31 = vld [vmem:[#allocation2 + $0x8] sm:$0xff]  ;;  %v425_v4 = vmul.f32 %v424_v3, %v2169_v2  ;;  %v439_v8 = vmul.f32 %v438_v7, %v2169_v2  ;;  %v453_v11 = vmul.f32 %v452_v10, %v2169_v2  ;;  %v467_v14 = vmul.f32 %v466_v13, %v2169_v2 }
  0xd2   : > { %v242_v33 = vmul.f32 %v240_v27, %v2121_v31  ;;  %v256_v36 = vmul.f32 %v254_v30, %v2121_v31  ;;  %v270_v39 = vmul.f32 %v268_v34, %v2121_v31  ;;  %v284_v42 = vmul.f32 %v282_v37, %v2121_v31  ;;  %v2147_v50 = vld [vmem:[#allocation2 + $0x9] sm:$0xff] }
  0xd3   : > { %v298_v45 = vmul.f32 %v296_v40, %v2121_v31  ;;  %v312_v49 = vmul.f32 %v310_v43, %v2121_v31  ;;  %v334_v53 = vmul.f32 %v332_v47, %v2147_v50  ;;  %v348_v56 = vmul.f32 %v346_v51, %v2147_v50  ;;  %v2175_v6 = vld [vmem:[#allocation2 + $0xa] sm:$0xff] }
  0xd4   : > { %259 = vrot.lane.b32.xlu0 %v255_v32, %s1955_s27  ;;  %247 = vrot.lane.b32.xlu1 %v242_v33, %s1954_s17  ;;  %v362_v59 = vmul.f32 %v360_v54, %v2147_v50  ;;  %v376_v62 = vmul.f32 %v374_v57, %v2147_v50  ;;  %v390_v1 = vmul.f32 %v388_v60, %v2147_v50  ;;  %v2203_v26 = vld [vmem:[#allocation2 + $0xb] sm:$0xff]  ;;  %v530_v27 = vstv %s1672_s5  ;;  %s2251_s5 = sld [smem:[#allocation7 + $0x25]] }
  0xd5   : > { %v404_v5 = vmul.f32 %v402_v63, %v2147_v50  ;;  %v426_v9 = vmul.f32 %v424_v3, %v2175_v6  ;;  %v440_v12 = vmul.f32 %v438_v7, %v2175_v6  ;;  %v454_v15 = vmul.f32 %v452_v10, %v2175_v6 }
  0xd6   : > { %v481_v17 = vmul.f32 %v480_v16, %v2169_v2  ;;  %v468_v18 = vmul.f32 %v466_v13, %v2175_v6  ;;  %v495_v20 = vmul.f32 %v494_v19, %v2169_v2  ;;  %v482_v21 = vmul.f32 %v480_v16, %v2175_v6 }
  0xd7   : > { %v517_v24 = vmul.f32 %v516_v23, %v2197_v22  ;;  %v496_v25 = vmul.f32 %v494_v19, %v2175_v6  ;;  %v531_v29 = vmul.f32 %v530_v27, %v2197_v22  ;;  %v518_v30 = vmul.f32 %v516_v23, %v2203_v26 }
  0xd8   : > { %273 = vrot.lane.b32.xlu0 %v269_v35, %s1956_s28  ;;  %261 = vrot.lane.b32.xlu1 %v256_v36, %s1955_s27  ;;  %v544_v32 = vstv %s1673_s8  ;;  %v532_v34 = vmul.f32 %v530_v27, %v2203_v26  ;;  %v558_v35 = vstv %s1674_s24  ;;  %s2253_s8 = sld [smem:[#allocation7]]  ;;  %s2262_s24 = sld [smem:[#allocation7 + $0x26]] }
  0xd9   : > { %v545_v33 = vmul.f32 %v544_v32, %v2197_v22  ;;  %v559_v36 = vmul.f32 %v558_v35, %v2197_v22  ;;  %v546_v37 = vmul.f32 %v544_v32, %v2203_v26  ;;  %v560_v40 = vmul.f32 %v558_v35, %v2203_v26 }
  0xda   : > { %v622_v51 = vstv %s1679_s29  ;;  %v636_v54 = vstv %s1680_s7  ;;  %v650_v57 = vstv %s1681_s16  ;;  %v664_v60 = vstv %s1682_s26  ;;  %s2290_s29 = sld [smem:[#allocation7 + $0x29]]  ;;  %s2297_s7 = sld [smem:[#allocation7 + $0x2b]] }
  0xdb   : > { %v678_v63 = vstv %s1683_s30  ;;  %s2306_s16 = sld [smem:[#allocation7 + $0x2c]]  ;;  %s2316_s26 = sld [smem:[#allocation7 + $0x2d]] }
  0xdc   : > { %287 = vrot.lane.b32.xlu0 %v283_v38, %s1957_s4  ;;  %275 = vrot.lane.b32.xlu1 %v270_v39, %s1956_s28  ;;  %v572_v38 = vstv %s1675_s25  ;;  %s2271_s25 = sld [smem:[#allocation7 + $0x27]]  ;;  %s2325_s30 = sld [smem:[#allocation7 + $0x2e]] }
  0xdd   : > { %v573_v39 = vmul.f32 %v572_v38, %v2197_v22  ;;  %v574_v43 = vmul.f32 %v572_v38, %v2203_v26 }
  0xde   : > { %v234_v13 = vstv %s2253_s8  ;;  %v728_v19 = vstv %s2262_s24  ;;  %s2341_s8 = sld [smem:[#allocation7 + $0x30]]  ;;  %s2348_s24 = sld [smem:[#allocation7 + $0x32]] }
  0xdf   : > { %v236_v27 = vmul.f32 %v234_v13, %v2121_v31 }
  0xe0   : > { %301 = vrot.lane.b32.xlu0 %v297_v41, %s1958_s6  ;;  %289 = vrot.lane.b32.xlu1 %v284_v42, %s1957_s4  ;;  %v586_v41 = vstv %s1676_s20  ;;  %s2280_s20 = sld [smem:[#allocation7 + $0x28]] }
  0xe1   : > { %v587_v42 = vmul.f32 %v586_v41, %v2197_v22 }
  0xe4   : > { %315 = vrot.lane.b32.xlu0 %v311_v44, %s1959_s19  ;;  %303 = vrot.lane.b32.xlu1 %v298_v45, %s1958_s6  ;;  %v2225_v44 = vld [vmem:[#allocation2 + $0x4] sm:$0xff]  ;;  %v608_v45 = vstv %s1678_s23  ;;  %s2282_s23 = sld [smem:[#allocation7 + $0x7]] }
  0xe5   : > { %v609_v47 = vmul.f32 %v608_v45, %v2225_v44 }
  0xe6   : > { %v756_v38 = vstv %s2280_s20  ;;  %s2367_s20 = sld [smem:[#allocation7 + $0x34]] }
  0xe8   : > { %337 = vrot.lane.b32.xlu0 %v333_v48, %s1954_s17  ;;  %317 = vrot.lane.b32.xlu1 %v312_v49, %s1959_s19  ;;  %v588_v48 = vmul.f32 %v586_v41, %v2203_v26  ;;  %v2231_v49 = vld [vmem:[#allocation2 + $0xc] sm:$0xff] }
  0xe9   : > { %v666_v3 = vmul.f32 %v664_v60, %v2231_v49  ;;  %v680_v10 = vmul.f32 %v678_v63, %v2231_v49 }
  0xec   : > { %351 = vrot.lane.b32.xlu0 %v347_v52, %s1955_s27  ;;  %339 = vrot.lane.b32.xlu1 %v334_v53, %s1954_s17  ;;  %v623_v52 = vmul.f32 %v622_v51, %v2225_v44  ;;  %v610_v53 = vmul.f32 %v608_v45, %v2231_v49 }
  0xf0   : > { %365 = vrot.lane.b32.xlu0 %v361_v55, %s1956_s28  ;;  %353 = vrot.lane.b32.xlu1 %v348_v56, %s1955_s27  ;;  %v637_v55 = vmul.f32 %v636_v54, %v2225_v44  ;;  %v624_v56 = vmul.f32 %v622_v51, %v2231_v49 }
  0xf4   : > { %379 = vrot.lane.b32.xlu0 %v375_v58, %s1957_s4  ;;  %367 = vrot.lane.b32.xlu1 %v362_v59, %s1956_s28  ;;  %v651_v58 = vmul.f32 %v650_v57, %v2225_v44  ;;  %v638_v59 = vmul.f32 %v636_v54, %v2231_v49 }
  0xf8   : > { %393 = vrot.lane.b32.xlu0 %v389_v61, %s1958_s6  ;;  %381 = vrot.lane.b32.xlu1 %v376_v62, %s1957_s4  ;;  %v665_v61 = vmul.f32 %v664_v60, %v2225_v44  ;;  %v652_v62 = vmul.f32 %v650_v57, %v2231_v49  ;;  %v2313_v60 = vld [vmem:[#allocation2 + $0x6] sm:$0xff] }
  0xfc   : > { %407 = vrot.lane.b32.xlu0 %v403_v0, %s1959_s19  ;;  %395 = vrot.lane.b32.xlu1 %v390_v1, %s1958_s6  ;;  %v679_v1 = vmul.f32 %v678_v63, %v2225_v44 }
 0x100   : > { %429 = vrot.lane.b32.xlu0 %v425_v4, %s1954_s17  ;;  %409 = vrot.lane.b32.xlu1 %v404_v5, %s1959_s19  ;;  %v2259_v4 = vld [vmem:[#allocation2 + $0x5] sm:$0xff]  ;;  %v700_v5 = vstv %s2245_s3  ;;  %s2332_s3 = sld [smem:[#allocation7 + $0x2f]] }
 0x101   : > { %v757_v45 = vmul.f32 %v756_v38, %v2259_v4 }
 0x104   : > { %443 = vrot.lane.b32.xlu0 %v439_v8, %s1955_s27  ;;  %431 = vrot.lane.b32.xlu1 %v426_v9, %s1954_s17  ;;  %v701_v9 = vmul.f32 %v700_v5, %v2259_v4 }
 0x108   : > { %457 = vrot.lane.b32.xlu0 %v453_v11, %s1956_s28  ;;  %445 = vrot.lane.b32.xlu1 %v440_v12, %s1955_s27  ;;  %v2268_v11 = vld [vmem:[#allocation2 + $0xd] sm:$0xff]  ;;  %v714_v12 = vstv %s2251_s5  ;;  %s2334_s5 = sld [smem:[#allocation7 + $0xe]] }
 0x109   : > { %v715_v16 = vmul.f32 %v714_v12, %v2259_v4 }
 0x10c   : > { %471 = vrot.lane.b32.xlu0 %v467_v14, %s1957_s4  ;;  %459 = vrot.lane.b32.xlu1 %v454_v15, %s1956_s28 }
 0x110   : > { %485 = vrot.lane.b32.xlu0 %v481_v17, %s1958_s6  ;;  %473 = vrot.lane.b32.xlu1 %v468_v18, %s1957_s4  ;;  %v702_v17 = vmul.f32 %v700_v5, %v2268_v11  ;;  %v235_v18 = vmul.f32 %v234_v13, %v2117_v28  ;;  %v820_v13 = vstv %s2316_s26  ;;  %s2399_s26 = sld [smem:[#allocation7 + $0x39]] }
 0x114   : > { %499 = vrot.lane.b32.xlu0 %v495_v20, %s1959_s19  ;;  %487 = vrot.lane.b32.xlu1 %v482_v21, %s1958_s6 }
 0x118   : > { %521 = vrot.lane.b32.xlu0 %v517_v24, %s1954_s17  ;;  %501 = vrot.lane.b32.xlu1 %v496_v25, %s1959_s19  ;;  %v729_v24 = vmul.f32 %v728_v19, %v2259_v4  ;;  %v716_v25 = vmul.f32 %v714_v12, %v2268_v11 }
 0x11c   : > { %535 = vrot.lane.b32.xlu0 %v531_v29, %s1955_s27  ;;  %523 = vrot.lane.b32.xlu1 %v518_v30, %s1954_s17  ;;  %v742_v29 = vstv %s2271_s25  ;;  %s2357_s25 = sld [smem:[#allocation7 + $0x33]] }
 0x11d   : > { %v743_v35 = vmul.f32 %v742_v29, %v2259_v4 }
 0x120   : > { %549 = vrot.lane.b32.xlu0 %v545_v33, %s1956_s28  ;;  %537 = vrot.lane.b32.xlu1 %v532_v34, %s1955_s27 }
 0x124   : > { %563 = vrot.lane.b32.xlu0 %v559_v36, %s1957_s4  ;;  %551 = vrot.lane.b32.xlu1 %v546_v37, %s1956_s28  ;;  %v730_v36 = vmul.f32 %v728_v19, %v2268_v11 }
 0x128   : > { %577 = vrot.lane.b32.xlu0 %v573_v39, %s1958_s6  ;;  %565 = vrot.lane.b32.xlu1 %v560_v40, %s1957_s4  ;;  %v326_v39 = vstv %s2282_s23  ;;  %s2376_s23 = sld [smem:[#allocation7 + $0x35]] }
 0x12c   : > { %591 = vrot.lane.b32.xlu0 %v587_v42, %s1959_s19  ;;  %579 = vrot.lane.b32.xlu1 %v574_v43, %s1958_s6 }
 0x130   : > { %613 = vrot.lane.b32.xlu0 %v609_v47, %s1954_s17  ;;  %593 = vrot.lane.b32.xlu1 %v588_v48, %s1959_s19  ;;  %v744_v47 = vmul.f32 %v742_v29, %v2268_v11  ;;  %v327_v48 = vmul.f32 %v326_v39, %v2141_v46  ;;  %v328_v46 = vmul.f32 %v326_v39, %v2147_v50  ;;  %v806_v50 = vstv %s2306_s16  ;;  %s2392_s16 = sld [smem:[#allocation7 + $0x37]] }
 0x134   : > { %627 = vrot.lane.b32.xlu0 %v623_v52, %s1955_s27  ;;  %615 = vrot.lane.b32.xlu1 %v610_v53, %s1954_s17  ;;  %v770_v53 = vstv %s2290_s29  ;;  %s2383_s29 = sld [smem:[#allocation7 + $0x36]] }
 0x135   : > { %v772_v5 = vmul.f32 %v770_v53, %v2268_v11 }
 0x138   : > { %641 = vrot.lane.b32.xlu0 %v637_v55, %s1956_s28  ;;  %629 = vrot.lane.b32.xlu1 %v624_v56, %s1955_s27 }
 0x13c   : > { %655 = vrot.lane.b32.xlu0 %v651_v58, %s1957_s4  ;;  %643 = vrot.lane.b32.xlu1 %v638_v59, %s1956_s28  ;;  %v771_v58 = vmul.f32 %v770_v53, %v2259_v4  ;;  %v758_v59 = vmul.f32 %v756_v38, %v2268_v11 }
 0x140   : > { %669 = vrot.lane.b32.xlu0 %v665_v61, %s1958_s6  ;;  %657 = vrot.lane.b32.xlu1 %v652_v62, %s1957_s4  ;;  %v792_v62 = vstv %s2297_s7  ;;  %s2385_s7 = sld [smem:[#allocation7 + $0x15]] }
 0x142   : > { %v246_v0 = vpop.permute.xlu0 %245 }
 0x143   : > { %v251_v20 = vadd.f32 %v246_v0, %v235_v18 }
 0x144   : > { %683 = vrot.lane.b32.xlu0 %v679_v1, %s1959_s19  ;;  %671 = vrot.lane.b32.xlu1 %v666_v3, %s1958_s6  ;;  %v793_v3 = vmul.f32 %v792_v62, %v2313_v60 }
 0x146   : > { %v248_v7 = vpop.permute.xlu1 %247  ;;  %v260_v8 = vpop.permute.xlu0 %259 }
 0x147   : > { %v265_v28 = vadd.f32 %v260_v8, %v251_v20  ;;  %v252_v30 = vadd.f32 %v248_v7, %v236_v27  ;;  %v2322_v7 = vld [vmem:[#allocation2 + $0xe] sm:$0xff]  ;;  %v834_v20 = vstv %s2325_s30  ;;  %s2408_s30 = sld [smem:[#allocation7 + $0x3a]] }
 0x148   : > { %705 = vrot.lane.b32.xlu0 %v701_v9, %s1954_s17  ;;  %685 = vrot.lane.b32.xlu1 %v680_v10, %s1959_s19  ;;  %v807_v10 = vmul.f32 %v806_v50, %v2313_v60  ;;  %v794_v12 = vmul.f32 %v792_v62, %v2322_v7  ;;  %v808_v18 = vmul.f32 %v806_v50, %v2322_v7 }
 0x149   : > { %v835_v27 = vmul.f32 %v834_v20, %v2313_v60  ;;  %v836_v38 = vmul.f32 %v834_v20, %v2322_v7 }
 0x14a   : > { %v262_v14 = vpop.permute.xlu1 %261  ;;  %v274_v15 = vpop.permute.xlu0 %273 }
 0x14b   : > { %v279_v32 = vadd.f32 %v274_v15, %v265_v28  ;;  %v266_v37 = vadd.f32 %v262_v14, %v252_v30  ;;  %v822_v28 = vmul.f32 %v820_v13, %v2322_v7 }
 0x14c   : > { %719 = vrot.lane.b32.xlu0 %v715_v16, %s1955_s27  ;;  %707 = vrot.lane.b32.xlu1 %v702_v17, %s1954_s17  ;;  %v821_v17 = vmul.f32 %v820_v13, %v2313_v60  ;;  %v926_v13 = vstv %s2376_s23  ;;  %s2459_s23 = sld [smem:[#allocation7 + $0x41]] }
 0x14e   : > { %v276_v21 = vpop.permute.xlu1 %275  ;;  %v288_v23 = vpop.permute.xlu0 %287 }
 0x14f   : > { %v293_v31 = vadd.f32 %v288_v23, %v279_v32  ;;  %v280_v40 = vadd.f32 %v276_v21, %v266_v37  ;;  %v848_v32 = vstv %s2332_s3  ;;  %s2418_s3 = sld [smem:[#allocation7 + $0x3b]] }
 0x150   : > { %733 = vrot.lane.b32.xlu0 %v729_v24, %s1956_s28  ;;  %721 = vrot.lane.b32.xlu1 %v716_v25, %s1955_s27 }
 0x152   : > { %v290_v33 = vpop.permute.xlu1 %289  ;;  %v302_v34 = vpop.permute.xlu0 %301 }
 0x153   : > { %v307_v41 = vadd.f32 %v302_v34, %v293_v31  ;;  %v294_v51 = vadd.f32 %v290_v33, %v280_v40  ;;  %v418_v33 = vstv %s2334_s5  ;;  %v849_v31 = vmul.f32 %v848_v32, %v2313_v60  ;;  %s2427_s5 = sld [smem:[#allocation7 + $0x3c]] }
 0x154   : > { %747 = vrot.lane.b32.xlu0 %v743_v35, %s1957_s4  ;;  %735 = vrot.lane.b32.xlu1 %v730_v36, %s1956_s28  ;;  %v419_v39 = vmul.f32 %v418_v33, %v2169_v2  ;;  %v420_v2 = vmul.f32 %v418_v33, %v2175_v6  ;;  %v2374_v6 = vld [vmem:[#allocation2 + $0x20] sm:$0xff] }
 0x156   : > { %v304_v42 = vpop.permute.xlu1 %303  ;;  %v316_v43 = vpop.permute.xlu0 %315 }
 0x157   : > { %v321_v52 = vadd.f32 %v316_v43, %v307_v41  ;;  %v308_v54 = vadd.f32 %v304_v42, %v294_v51  ;;  %v862_v42 = vstv %s2341_s8  ;;  %s2434_s8 = sld [smem:[#allocation7 + $0x3d]] }
 0x158   : > { %761 = vrot.lane.b32.xlu0 %v757_v45, %s1958_s6  ;;  %749 = vrot.lane.b32.xlu1 %v744_v47, %s1957_s4  ;;  %v863_v51 = vmul.f32 %v862_v42, %v2313_v60 }
 0x159   : > { %v329_v55 = vadd.f32 %v327_v48, %v321_v52  ;;  %v850_v52 = vmul.f32 %v848_v32, %v2322_v7  ;;  %v928_v32 = vmul.f32 %v926_v13, %v2374_v6 }
 0x15a   : > { %v318_v56 = vpop.permute.xlu1 %317  ;;  %v338_v57 = vpop.permute.xlu0 %337 }
 0x15b   : > { %v322_v61 = vadd.f32 %v318_v56, %v308_v54  ;;  %v343_v14 = vadd.f32 %v338_v57, %v329_v55  ;;  %v2364_v54 = vld [vmem:[#allocation2 + $0x18] sm:$0xff]  ;;  %v884_v55 = vstv %s2348_s24  ;;  %s2436_s24 = sld [smem:[#allocation7 + $0x1c]] }
 0x15c   : > { %775 = vrot.lane.b32.xlu0 %v771_v58, %s1959_s19  ;;  %763 = vrot.lane.b32.xlu1 %v758_v59, %s1958_s6  ;;  %v885_v59 = vmul.f32 %v884_v55, %v2364_v54 }
 0x15d   : > { %v330_v63 = vadd.f32 %v328_v46, %v322_v61  ;;  %v864_v46 = vmul.f32 %v862_v42, %v2322_v7  ;;  %v898_v61 = vstv %s2357_s25  ;;  %s2443_s25 = sld [smem:[#allocation7 + $0x3e]] }
 0x15e   : > { %v340_v0 = vpop.permute.xlu1 %339  ;;  %v352_v1 = vpop.permute.xlu0 %351 }
 0x15f   : > { %v357_v19 = vadd.f32 %v352_v1, %v343_v14  ;;  %v344_v21 = vadd.f32 %v340_v0, %v330_v63  ;;  %v899_v0 = vmul.f32 %v898_v61, %v2364_v54  ;;  %v886_v1 = vmul.f32 %v884_v55, %v2374_v6 }
 0x160   : > { %797 = vrot.lane.b32.xlu0 %v793_v3, %s1954_s17  ;;  %777 = vrot.lane.b32.xlu1 %v772_v5, %s1959_s19  ;;  %v912_v3 = vstv %s2367_s20  ;;  %s2450_s20 = sld [smem:[#allocation7 + $0x40]] }
 0x162   : > { %v354_v8 = vpop.permute.xlu1 %353  ;;  %v366_v9 = vpop.permute.xlu0 %365 }
 0x163   : > { %v371_v23 = vadd.f32 %v366_v9, %v357_v19  ;;  %v358_v29 = vadd.f32 %v354_v8, %v344_v21  ;;  %v913_v9 = vmul.f32 %v912_v3, %v2364_v54  ;;  %v914_v19 = vmul.f32 %v912_v3, %v2374_v6 }
 0x164   : > { %811 = vrot.lane.b32.xlu0 %v807_v10, %s1955_s27  ;;  %799 = vrot.lane.b32.xlu1 %v794_v12, %s1954_s17  ;;  %v900_v10 = vmul.f32 %v898_v61, %v2374_v6  ;;  %v1018_v3 = vstv %s2427_s5  ;;  %s2510_s5 = sld [smem:[#allocation7 + $0x48]] }
 0x166   : > { %v368_v15 = vpop.permute.xlu1 %367  ;;  %v380_v16 = vpop.permute.xlu0 %379 }
 0x167   : > { %v385_v30 = vadd.f32 %v380_v16, %v371_v23  ;;  %v372_v34 = vadd.f32 %v368_v15, %v358_v29  ;;  %v940_v23 = vstv %s2383_s29  ;;  %s2469_s29 = sld [smem:[#allocation7 + $0x42]] }
 0x168   : > { %825 = vrot.lane.b32.xlu0 %v821_v17, %s1956_s28  ;;  %813 = vrot.lane.b32.xlu1 %v808_v18, %s1955_s27  ;;  %v927_v18 = vmul.f32 %v926_v13, %v2364_v54 }
 0x16a   : > { %v382_v24 = vpop.permute.xlu1 %381  ;;  %v394_v25 = vpop.permute.xlu0 %393 }
 0x16b   : > { %v399_v35 = vadd.f32 %v394_v25, %v385_v30  ;;  %v386_v40 = vadd.f32 %v382_v24, %v372_v34  ;;  %v510_v24 = vstv %s2385_s7  ;;  %v941_v30 = vmul.f32 %v940_v23, %v2364_v54  ;;  %s2478_s7 = sld [smem:[#allocation7 + $0x43]] }
 0x16c   : > { %839 = vrot.lane.b32.xlu0 %v835_v27, %s1957_s4  ;;  %827 = vrot.lane.b32.xlu1 %v822_v28, %s1956_s28  ;;  %v511_v33 = vmul.f32 %v510_v24, %v2197_v22  ;;  %v512_v22 = vmul.f32 %v510_v24, %v2203_v26  ;;  %v990_v26 = vstv %s2408_s30  ;;  %s2494_s30 = sld [smem:[#allocation7 + $0x45]] }
 0x16e   : > { %v396_v36 = vpop.permute.xlu1 %395  ;;  %v408_v37 = vpop.permute.xlu0 %407 }
 0x16f   : > { %v413_v41 = vadd.f32 %v408_v37, %v399_v35  ;;  %v400_v43 = vadd.f32 %v396_v36, %v386_v40  ;;  %v954_v36 = vstv %s2392_s16  ;;  %s2485_s16 = sld [smem:[#allocation7 + $0x44]] }
 0x170   : > { %853 = vrot.lane.b32.xlu0 %v849_v31, %s1958_s6  ;;  %841 = vrot.lane.b32.xlu1 %v836_v38, %s1957_s4  ;;  %v955_v40 = vmul.f32 %v954_v36, %v2364_v54 }
 0x171   : > { %v421_v45 = vadd.f32 %v419_v39, %v413_v41  ;;  %v942_v41 = vmul.f32 %v940_v23, %v2374_v6 }
 0x172   : > { %v410_v47 = vpop.permute.xlu1 %409  ;;  %v430_v48 = vpop.permute.xlu0 %429 }
 0x173   : > { %v414_v53 = vadd.f32 %v410_v47, %v400_v43  ;;  %v435_v5 = vadd.f32 %v430_v48, %v421_v45  ;;  %v2415_v43 = vld [vmem:[#allocation2 + $0x19] sm:$0xff]  ;;  %v976_v45 = vstv %s2399_s26  ;;  %s2487_s26 = sld [smem:[#allocation7 + $0x23]] }
 0x174   : > { %867 = vrot.lane.b32.xlu0 %v863_v51, %s1959_s19  ;;  %855 = vrot.lane.b32.xlu1 %v850_v52, %s1958_s6  ;;  %v977_v52 = vmul.f32 %v976_v45, %v2415_v43 }
 0x175   : > { %v422_v56 = vadd.f32 %v420_v2, %v414_v53  ;;  %v956_v2 = vmul.f32 %v954_v36, %v2374_v6  ;;  %v2424_v53 = vld [vmem:[#allocation2 + $0x21] sm:$0xff] }
 0x176   : > { %v432_v57 = vpop.permute.xlu1 %431  ;;  %v444_v58 = vpop.permute.xlu0 %443 }
 0x177   : > { %v449_v12 = vadd.f32 %v444_v58, %v435_v5  ;;  %v436_v14 = vadd.f32 %v432_v57, %v422_v56  ;;  %v978_v57 = vmul.f32 %v976_v45, %v2424_v53  ;;  %v991_v58 = vmul.f32 %v990_v26, %v2415_v43 }
 0x178   : > { %889 = vrot.lane.b32.xlu0 %v885_v59, %s1954_s17  ;;  %869 = vrot.lane.b32.xlu1 %v864_v46, %s1959_s19  ;;  %v1004_v59 = vstv %s2418_s3  ;;  %s2501_s3 = sld [smem:[#allocation7 + $0x47]] }
 0x17a   : > { %v446_v62 = vpop.permute.xlu1 %445  ;;  %v458_v63 = vpop.permute.xlu0 %457 }
 0x17b   : > { %v463_v15 = vadd.f32 %v458_v63, %v449_v12  ;;  %v450_v20 = vadd.f32 %v446_v62, %v436_v14  ;;  %v992_v63 = vmul.f32 %v990_v26, %v2424_v53  ;;  %v1019_v12 = vmul.f32 %v1018_v3, %v2415_v43 }
 0x17c   : > { %903 = vrot.lane.b32.xlu0 %v899_v0, %s1955_s27  ;;  %891 = vrot.lane.b32.xlu1 %v886_v1, %s1954_s17  ;;  %v1005_v0 = vmul.f32 %v1004_v59, %v2415_v43 }
 0x17e   : > { %v460_v50 = vpop.permute.xlu1 %459  ;;  %v472_v8 = vpop.permute.xlu0 %471 }
 0x17f   : > { %v477_v21 = vadd.f32 %v472_v8, %v463_v15  ;;  %v464_v25 = vadd.f32 %v460_v50, %v450_v20  ;;  %v1032_v15 = vstv %s2434_s8  ;;  %s2520_s8 = sld [smem:[#allocation7 + $0x49]] }
 0x180   : > { %917 = vrot.lane.b32.xlu0 %v913_v9, %s1956_s28  ;;  %905 = vrot.lane.b32.xlu1 %v900_v10, %s1955_s27  ;;  %v1006_v10 = vmul.f32 %v1004_v59, %v2424_v53  ;;  %v1033_v23 = vmul.f32 %v1032_v15, %v2415_v43  ;;  %v1110_v59 = vstv %s2478_s7  ;;  %s2561_s7 = sld [smem:[#allocation7 + $0x4f]] }
 0x182   : > { %v474_v16 = vpop.permute.xlu1 %473  ;;  %v486_v17 = vpop.permute.xlu0 %485 }
 0x183   : > { %v491_v27 = vadd.f32 %v486_v17, %v477_v21  ;;  %v478_v34 = vadd.f32 %v474_v16, %v464_v25  ;;  %v602_v16 = vstv %s2436_s24  ;;  %v1020_v21 = vmul.f32 %v1018_v3, %v2424_v53  ;;  %s2529_s24 = sld [smem:[#allocation7 + $0x4a]] }
 0x184   : > { %931 = vrot.lane.b32.xlu0 %v927_v18, %s1957_s4  ;;  %919 = vrot.lane.b32.xlu1 %v914_v19, %s1956_s28  ;;  %v603_v24 = vmul.f32 %v602_v16, %v2225_v44  ;;  %v604_v44 = vmul.f32 %v602_v16, %v2231_v49  ;;  %v1082_v49 = vstv %s2459_s23  ;;  %s2545_s23 = sld [smem:[#allocation7 + $0x4c]] }
 0x186   : > { %v488_v28 = vpop.permute.xlu1 %487  ;;  %v500_v29 = vpop.permute.xlu0 %499 }
 0x187   : > { %v505_v35 = vadd.f32 %v500_v29, %v491_v27  ;;  %v492_v37 = vadd.f32 %v488_v28, %v478_v34  ;;  %v1046_v28 = vstv %s2443_s25  ;;  %v1034_v34 = vmul.f32 %v1032_v15, %v2424_v53  ;;  %s2536_s25 = sld [smem:[#allocation7 + $0x4b]] }
 0x188   : > { %945 = vrot.lane.b32.xlu0 %v941_v30, %s1958_s6  ;;  %933 = vrot.lane.b32.xlu1 %v928_v32, %s1957_s4 }
 0x189   : > { %v513_v31 = vadd.f32 %v511_v33, %v505_v35  ;;  %v1047_v35 = vmul.f32 %v1046_v28, %v2415_v43 }
 0x18a   : > { %v502_v38 = vpop.permute.xlu1 %501  ;;  %v522_v39 = vpop.permute.xlu0 %521 }
 0x18b   : > { %v506_v42 = vadd.f32 %v502_v38, %v492_v37  ;;  %v527_v46 = vadd.f32 %v522_v39, %v513_v31  ;;  %v2466_v37 = vld [vmem:[#allocation2 + $0x1a] sm:$0xff]  ;;  %v1068_v31 = vstv %s2450_s20  ;;  %s2538_s20 = sld [smem:[#allocation7 + $0x2a]] }
 0x18c   : > { %959 = vrot.lane.b32.xlu0 %v955_v40, %s1959_s19  ;;  %947 = vrot.lane.b32.xlu1 %v942_v41, %s1958_s6  ;;  %v1048_v41 = vmul.f32 %v1046_v28, %v2424_v53 }
 0x18d   : > { %v514_v47 = vadd.f32 %v512_v22, %v506_v42  ;;  %v1069_v22 = vmul.f32 %v1068_v31, %v2466_v37  ;;  %v2475_v42 = vld [vmem:[#allocation2 + $0x22] sm:$0xff] }
 0x18e   : > { %v524_v48 = vpop.permute.xlu1 %523  ;;  %v536_v51 = vpop.permute.xlu0 %535 }
 0x18f   : > { %v541_v1 = vadd.f32 %v536_v51, %v527_v46  ;;  %v528_v5 = vadd.f32 %v524_v48, %v514_v47  ;;  %v1070_v48 = vmul.f32 %v1068_v31, %v2475_v42  ;;  %v1083_v51 = vmul.f32 %v1082_v49, %v2466_v37 }
 0x190   : > { %981 = vrot.lane.b32.xlu0 %v977_v52, %s1954_s17  ;;  %961 = vrot.lane.b32.xlu1 %v956_v2, %s1959_s19  ;;  %v1096_v52 = vstv %s2469_s29  ;;  %s2552_s29 = sld [smem:[#allocation7 + $0x4e]] }
 0x192   : > { %v538_v55 = vpop.permute.xlu1 %537  ;;  %v550_v56 = vpop.permute.xlu0 %549 }
 0x193   : > { %v555_v50 = vadd.f32 %v550_v56, %v541_v1  ;;  %v542_v13 = vadd.f32 %v538_v55, %v528_v5  ;;  %v1084_v56 = vmul.f32 %v1082_v49, %v2475_v42  ;;  %v1111_v1 = vmul.f32 %v1110_v59, %v2466_v37 }
 0x194   : > { %983 = vrot.lane.b32.xlu1 %v978_v57, %s1954_s17  ;;  %995 = vrot.lane.b32.xlu0 %v991_v58, %s1955_s27  ;;  %v1097_v57 = vmul.f32 %v1096_v52, %v2466_v37 }
 0x196   : > { %v552_v61 = vpop.permute.xlu1 %551  ;;  %v564_v62 = vpop.permute.xlu0 %563 }
 0x197   : > { %v569_v14 = vadd.f32 %v564_v62, %v555_v50  ;;  %v556_v17 = vadd.f32 %v552_v61, %v542_v13  ;;  %v1124_v50 = vstv %s2485_s16  ;;  %s2571_s16 = sld [smem:[#allocation7 + $0x50]] }
 0x198   : > { %997 = vrot.lane.b32.xlu1 %v992_v63, %s1955_s27  ;;  %1009 = vrot.lane.b32.xlu0 %v1005_v0, %s1956_s28  ;;  %v1098_v0 = vmul.f32 %v1096_v52, %v2475_v42  ;;  %v1125_v15 = vmul.f32 %v1124_v50, %v2466_v37  ;;  %v1202_v52 = vstv %s2529_s24  ;;  %s2612_s24 = sld [smem:[#allocation7 + $0x56]] }
 0x19a   : > { %v566_v8 = vpop.permute.xlu1 %565  ;;  %v578_v9 = vpop.permute.xlu0 %577 }
 0x19b   : > { %v583_v18 = vadd.f32 %v578_v9, %v569_v14  ;;  %v570_v25 = vadd.f32 %v566_v8, %v556_v17  ;;  %v694_v8 = vstv %s2487_s26  ;;  %v1112_v14 = vmul.f32 %v1110_v59, %v2475_v42  ;;  %s2580_s26 = sld [smem:[#allocation7 + $0x51]] }
 0x19c   : > { %1011 = vrot.lane.b32.xlu1 %v1006_v10, %s1956_s28  ;;  %1023 = vrot.lane.b32.xlu0 %v1019_v12, %s1957_s4  ;;  %v695_v16 = vmul.f32 %v694_v8, %v2259_v4  ;;  %v696_v4 = vmul.f32 %v694_v8, %v2268_v11  ;;  %v1174_v11 = vstv %s2510_s5  ;;  %s2596_s5 = sld [smem:[#allocation7 + $0x53]] }
 0x19e   : > { %v580_v19 = vpop.permute.xlu1 %579  ;;  %v592_v20 = vpop.permute.xlu0 %591 }
 0x19f   : > { %v597_v27 = vadd.f32 %v592_v20, %v583_v18  ;;  %v584_v29 = vadd.f32 %v580_v19, %v570_v25  ;;  %v1138_v19 = vstv %s2494_s30  ;;  %v1126_v25 = vmul.f32 %v1124_v50, %v2475_v42  ;;  %s2587_s30 = sld [smem:[#allocation7 + $0x52]] }
 0x1a0   : > { %1025 = vrot.lane.b32.xlu1 %v1020_v21, %s1957_s4  ;;  %1037 = vrot.lane.b32.xlu0 %v1033_v23, %s1958_s6 }
 0x1a1   : > { %v605_v30 = vadd.f32 %v603_v24, %v597_v27  ;;  %v1139_v27 = vmul.f32 %v1138_v19, %v2466_v37 }
 0x1a2   : > { %v594_v32 = vpop.permute.xlu1 %593  ;;  %v614_v33 = vpop.permute.xlu0 %613 }
 0x1a3   : > { %v598_v36 = vadd.f32 %v594_v32, %v584_v29  ;;  %v619_v2 = vadd.f32 %v614_v33, %v605_v30  ;;  %v2517_v29 = vld [vmem:[#allocation2 + $0x1b] sm:$0xff]  ;;  %v1160_v30 = vstv %s2501_s3  ;;  %s2591_s3 = sld [smem:[#allocation7 + $0x31]] }
 0x1a4   : > { %1039 = vrot.lane.b32.xlu1 %v1034_v34, %s1958_s6  ;;  %1051 = vrot.lane.b32.xlu0 %v1047_v35, %s1959_s19  ;;  %v1140_v35 = vmul.f32 %v1138_v19, %v2475_v42 }
 0x1a5   : > { %v606_v38 = vadd.f32 %v604_v44, %v598_v36  ;;  %v1161_v44 = vmul.f32 %v1160_v30, %v2517_v29  ;;  %v2526_v36 = vld [vmem:[#allocation2 + $0x23] sm:$0xff] }
 0x1a6   : > { %v616_v39 = vpop.permute.xlu1 %615  ;;  %v628_v40 = vpop.permute.xlu0 %627 }
 0x1a7   : > { %v633_v58 = vadd.f32 %v628_v40, %v619_v2  ;;  %v620_v46 = vadd.f32 %v616_v39, %v606_v38  ;;  %v1162_v39 = vmul.f32 %v1160_v30, %v2526_v36  ;;  %v1175_v40 = vmul.f32 %v1174_v11, %v2517_v29 }
 0x1a8   : > { %1053 = vrot.lane.b32.xlu1 %v1048_v41, %s1959_s19  ;;  %1073 = vrot.lane.b32.xlu0 %v1069_v22, %s1954_s17  ;;  %v1188_v41 = vstv %s2520_s8  ;;  %s2603_s8 = sld [smem:[#allocation7 + $0x55]] }
 0x1aa   : > { %v630_v45 = vpop.permute.xlu1 %629  ;;  %v642_v47 = vpop.permute.xlu0 %641 }
 0x1ab   : > { %v647_v61 = vadd.f32 %v642_v47, %v633_v58  ;;  %v634_v3 = vadd.f32 %v630_v45, %v620_v46  ;;  %v1176_v47 = vmul.f32 %v1174_v11, %v2526_v36  ;;  %v1203_v58 = vmul.f32 %v1202_v52, %v2517_v29 }
 0x1ac   : > { %1075 = vrot.lane.b32.xlu1 %v1070_v48, %s1954_s17  ;;  %1087 = vrot.lane.b32.xlu0 %v1083_v51, %s1955_s27  ;;  %v1189_v48 = vmul.f32 %v1188_v41, %v2517_v29 }
 0x1ae   : > { %v644_v26 = vpop.permute.xlu1 %643  ;;  %v656_v55 = vpop.permute.xlu0 %655 }
 0x1af   : > { %v661_v5 = vadd.f32 %v656_v55, %v647_v61  ;;  %v648_v9 = vadd.f32 %v644_v26, %v634_v3  ;;  %v1216_v61 = vstv %s2536_s25  ;;  %s2622_s25 = sld [smem:[#allocation7 + $0x57]] }
 0x1b0   : > { %1089 = vrot.lane.b32.xlu1 %v1084_v56, %s1955_s27  ;;  %1101 = vrot.lane.b32.xlu0 %v1097_v57, %s1956_s28  ;;  %v1190_v57 = vmul.f32 %v1188_v41, %v2526_v36  ;;  %v1217_v50 = vmul.f32 %v1216_v61, %v2517_v29 }
 0x1b2   : > { %v658_v62 = vpop.permute.xlu1 %657  ;;  %v670_v63 = vpop.permute.xlu0 %669 }
 0x1b3   : > { %v675_v10 = vadd.f32 %v670_v63, %v661_v5  ;;  %v662_v17 = vadd.f32 %v658_v62, %v648_v9  ;;  %v786_v62 = vstv %s2538_s20  ;;  %v1204_v5 = vmul.f32 %v1202_v52, %v2526_v36  ;;  %s2631_s20 = sld [smem:[#allocation7 + $0x58]] }
 0x1b4   : > { %1103 = vrot.lane.b32.xlu1 %v1098_v0, %s1956_s28  ;;  %1115 = vrot.lane.b32.xlu0 %v1111_v1, %s1957_s4  ;;  %v787_v8 = vmul.f32 %v786_v62, %v2313_v60  ;;  %v788_v60 = vmul.f32 %v786_v62, %v2322_v7 }
 0x1b6   : > { %v672_v12 = vpop.permute.xlu1 %671  ;;  %v684_v13 = vpop.permute.xlu0 %683 }
 0x1b7   : > { %v689_v18 = vadd.f32 %v684_v13, %v675_v10  ;;  %v676_v20 = vadd.f32 %v672_v12, %v662_v17  ;;  %v1230_v12 = vstv %s2545_s23  ;;  %v1218_v17 = vmul.f32 %v1216_v61, %v2526_v36  ;;  %s2638_s23 = sld [smem:[#allocation7 + $0x59]] }
 0x1b8   : > { %1117 = vrot.lane.b32.xlu1 %v1112_v14, %s1957_s4  ;;  %1129 = vrot.lane.b32.xlu0 %v1125_v15, %s1958_s6 }
 0x1b9   : > { %v697_v21 = vadd.f32 %v695_v16, %v689_v18  ;;  %v1231_v18 = vmul.f32 %v1230_v12, %v2517_v29 }
 0x1ba   : > { %v686_v23 = vpop.permute.xlu1 %685  ;;  %v706_v24 = vpop.permute.xlu0 %705 }
 0x1bb   : > { %v690_v28 = vadd.f32 %v686_v23, %v676_v20  ;;  %v711_v22 = vadd.f32 %v706_v24, %v697_v21  ;;  %v2568_v21 = vld [vmem:[#allocation2 + $0x1c] sm:$0xff]  ;;  %v1252_v23 = vstv %s2552_s29  ;;  %s2642_s29 = sld [smem:[#allocation7 + $0x38]] }
 0x1bc   : > { %1131 = vrot.lane.b32.xlu1 %v1126_v25, %s1958_s6  ;;  %1143 = vrot.lane.b32.xlu0 %v1139_v27, %s1959_s19  ;;  %v1253_v7 = vmul.f32 %v1252_v23, %v2568_v21 }
 0x1bd   : > { %v698_v32 = vadd.f32 %v696_v4, %v690_v28  ;;  %v1232_v4 = vmul.f32 %v1230_v12, %v2526_v36 }
 0x1be   : > { %v708_v33 = vpop.permute.xlu1 %707  ;;  %v720_v34 = vpop.permute.xlu0 %719 }
 0x1bf   : > { %v725_v51 = vadd.f32 %v720_v34, %v711_v22  ;;  %v712_v2 = vadd.f32 %v708_v33, %v698_v32  ;;  %v2577_v32 = vld [vmem:[#allocation2 + $0x24] sm:$0xff]  ;;  %v1266_v33 = vstv %s2561_s7  ;;  %s2647_s7 = sld [smem:[#allocation7 + $0x5a]] }
 0x1c0   : > { %1145 = vrot.lane.b32.xlu1 %v1140_v35, %s1959_s19  ;;  %1165 = vrot.lane.b32.xlu0 %v1161_v44, %s1954_s17  ;;  %v1254_v44 = vmul.f32 %v1252_v23, %v2577_v32  ;;  %v1267_v11 = vmul.f32 %v1266_v33, %v2568_v21  ;;  %v1268_v22 = vmul.f32 %v1266_v33, %v2577_v32  ;;  %v2628_v23 = vld [vmem:[#allocation2 + $0x25] sm:$0xff]  ;;  %v1372_v33 = vstv %s2622_s25 }
 0x1c2   : > { %v722_v31 = vpop.permute.xlu1 %721  ;;  %v734_v38 = vpop.permute.xlu0 %733 }
 0x1c3   : > { %v739_v26 = vadd.f32 %v734_v38, %v725_v51  ;;  %v726_v59 = vadd.f32 %v722_v31, %v712_v2 }
 0x1c4   : > { %1167 = vrot.lane.b32.xlu1 %v1162_v39, %s1954_s17  ;;  %1179 = vrot.lane.b32.xlu0 %v1175_v40, %s1955_s27  ;;  %v1280_v39 = vstv %s2571_s16  ;;  %s2654_s16 = sld [smem:[#allocation7 + $0x5c]] }
 0x1c5   : > { %v1282_v2 = vmul.f32 %v1280_v39, %v2577_v32 }
 0x1c6   : > { %v736_v49 = vpop.permute.xlu1 %735  ;;  %v748_v45 = vpop.permute.xlu0 %747 }
 0x1c7   : > { %v753_v46 = vadd.f32 %v748_v45, %v739_v26  ;;  %v740_v63 = vadd.f32 %v736_v49, %v726_v59  ;;  %v1281_v49 = vmul.f32 %v1280_v39, %v2568_v21  ;;  %v1386_v39 = vstv %s2631_s20 }
 0x1c8   : > { %1181 = vrot.lane.b32.xlu1 %v1176_v47, %s1955_s27  ;;  %1193 = vrot.lane.b32.xlu0 %v1189_v48, %s1956_s28  ;;  %v1294_v48 = vstv %s2580_s26  ;;  %s2663_s26 = sld [smem:[#allocation7 + $0x5d]] }
 0x1c9   : > { %v1295_v26 = vmul.f32 %v1294_v48, %v2568_v21  ;;  %v1296_v61 = vmul.f32 %v1294_v48, %v2577_v32  ;;  %v970_v48 = vstv %s2642_s29 }
 0x1ca   : > { %v750_v55 = vpop.permute.xlu1 %749  ;;  %v762_v56 = vpop.permute.xlu0 %761 }
 0x1cb   : > { %v767_v0 = vadd.f32 %v762_v56, %v753_v46  ;;  %v754_v9 = vadd.f32 %v750_v55, %v740_v63 }
 0x1cc   : > { %1195 = vrot.lane.b32.xlu1 %v1190_v57, %s1956_s28  ;;  %1207 = vrot.lane.b32.xlu0 %v1203_v58, %s1957_s4  ;;  %v1308_v57 = vstv %s2587_s30  ;;  %v878_v58 = vstv %s2591_s3  ;;  %s2673_s30 = sld [smem:[#allocation7 + $0x5e]]  ;;  %s2682_s3 = sld [smem:[#allocation7 + $0x5f]] }
 0x1cd   : > { %v1309_v62 = vmul.f32 %v1308_v57, %v2568_v21  ;;  %v880_v12 = vmul.f32 %v878_v58, %v2374_v6 }
 0x1ce   : > { %v764_v1 = vpop.permute.xlu1 %763  ;;  %v776_v3 = vpop.permute.xlu0 %775 }
 0x1cf   : > { %v781_v10 = vadd.f32 %v776_v3, %v767_v0  ;;  %v768_v13 = vadd.f32 %v764_v1, %v754_v9  ;;  %v879_v0 = vmul.f32 %v878_v58, %v2364_v54  ;;  %v1322_v3 = vstv %s2596_s5  ;;  %s2689_s5 = sld [smem:[#allocation7 + $0x60]] }
 0x1d0   : > { %1209 = vrot.lane.b32.xlu1 %v1204_v5, %s1957_s4  ;;  %1221 = vrot.lane.b32.xlu0 %v1217_v50, %s1958_s6  ;;  %v1310_v9 = vmul.f32 %v1308_v57, %v2577_v32  ;;  %v1414_v58 = vstv %s2647_s7 }
 0x1d1   : > { %v789_v14 = vadd.f32 %v787_v8, %v781_v10  ;;  %v1323_v10 = vmul.f32 %v1322_v3, %v2568_v21 }
 0x1d2   : > { %v778_v15 = vpop.permute.xlu1 %777  ;;  %v798_v16 = vpop.permute.xlu0 %797 }
 0x1d3   : > { %v782_v19 = vadd.f32 %v778_v15, %v768_v13  ;;  %v803_v20 = vadd.f32 %v798_v16, %v789_v14  ;;  %v2619_v14 = vld [vmem:[#allocation2 + $0x1d] sm:$0xff]  ;;  %v1344_v15 = vstv %s2603_s8  ;;  %s2693_s8 = sld [smem:[#allocation7 + $0x3f]] }
 0x1d4   : > { %1223 = vrot.lane.b32.xlu1 %v1218_v17, %s1958_s6  ;;  %1235 = vrot.lane.b32.xlu0 %v1231_v18, %s1959_s19  ;;  %v1345_v6 = vmul.f32 %v1344_v15, %v2619_v14 }
 0x1d5   : > { %v790_v24 = vadd.f32 %v788_v60, %v782_v19  ;;  %v1324_v60 = vmul.f32 %v1322_v3, %v2577_v32  ;;  %v2670_v3 = vld [vmem:[#allocation2 + $0x1e] sm:$0xff] }
 0x1d6   : > { %v800_v25 = vpop.permute.xlu1 %799  ;;  %v812_v27 = vpop.permute.xlu0 %811 }
 0x1d7   : > { %v804_v28 = vadd.f32 %v800_v25, %v790_v24  ;;  %v817_v30 = vadd.f32 %v812_v27, %v803_v20  ;;  %v1358_v24 = vstv %s2612_s24  ;;  %s2698_s24 = sld [smem:[#allocation7 + $0x61]] }
 0x1d8   : > { %1237 = vrot.lane.b32.xlu1 %v1232_v4, %s1959_s19  ;;  %1257 = vrot.lane.b32.xlu0 %v1253_v7, %s1954_s17  ;;  %v1346_v4 = vmul.f32 %v1344_v15, %v2628_v23  ;;  %v1359_v7 = vmul.f32 %v1358_v24, %v2619_v14 }
 0x1da   : > { %v814_v34 = vpop.permute.xlu1 %813  ;;  %v826_v35 = vpop.permute.xlu0 %825 }
 0x1db   : > { %v818_v31 = vadd.f32 %v814_v34, %v804_v28  ;;  %v831_v38 = vadd.f32 %v826_v35, %v817_v30 }
 0x1dc   : > { %1259 = vrot.lane.b32.xlu1 %v1254_v44, %s1954_s17  ;;  %1271 = vrot.lane.b32.xlu0 %v1267_v11, %s1955_s27  ;;  %v1360_v44 = vmul.f32 %v1358_v24, %v2628_v23  ;;  %v1373_v11 = vmul.f32 %v1372_v33, %v2619_v14 }
 0x1de   : > { %v828_v40 = vpop.permute.xlu1 %827  ;;  %v840_v41 = vpop.permute.xlu0 %839 }
 0x1df   : > { %v832_v45 = vadd.f32 %v828_v40, %v818_v31  ;;  %v845_v47 = vadd.f32 %v840_v41, %v831_v38 }
 0x1e0   : > { %1273 = vrot.lane.b32.xlu1 %v1268_v22, %s1955_s27  ;;  %1285 = vrot.lane.b32.xlu0 %v1281_v49, %s1956_s28  ;;  %v1374_v22 = vmul.f32 %v1372_v33, %v2628_v23  ;;  %v1387_v49 = vmul.f32 %v1386_v39, %v2619_v14 }
 0x1e2   : > { %v842_v51 = vpop.permute.xlu1 %841  ;;  %v854_v52 = vpop.permute.xlu0 %853 }
 0x1e3   : > { %v846_v55 = vadd.f32 %v842_v51, %v832_v45  ;;  %v859_v56 = vadd.f32 %v854_v52, %v845_v47  ;;  %v1400_v47 = vstv %s2638_s23 }
 0x1e4   : > { %1287 = vrot.lane.b32.xlu1 %v1282_v2, %s1956_s28  ;;  %1299 = vrot.lane.b32.xlu0 %v1295_v26, %s1957_s4  ;;  %v1388_v26 = vmul.f32 %v1386_v39, %v2628_v23 }
 0x1e6   : > { %v856_v59 = vpop.permute.xlu1 %855  ;;  %v868_v46 = vpop.permute.xlu0 %867 }
 0x1e7   : > { %v860_v63 = vadd.f32 %v856_v59, %v846_v55  ;;  %v873_v1 = vadd.f32 %v868_v46, %v859_v56  ;;  %v1401_v55 = vmul.f32 %v1400_v47, %v2619_v14  ;;  %v971_v56 = vmul.f32 %v970_v48, %v2415_v43 }
 0x1e8   : > { %1301 = vrot.lane.b32.xlu1 %v1296_v61, %s1957_s4  ;;  %1313 = vrot.lane.b32.xlu0 %v1309_v62, %s1958_s6 }
 0x1e9   : > { %v881_v5 = vadd.f32 %v879_v0, %v873_v1  ;;  %v1415_v0 = vmul.f32 %v1414_v58, %v2619_v14  ;;  %v972_v1 = vmul.f32 %v970_v48, %v2424_v53  ;;  %v1450_v53 = vstv %s2663_s26 }
 0x1ea   : > { %v870_v50 = vpop.permute.xlu1 %869  ;;  %v890_v8 = vpop.permute.xlu0 %889 }
 0x1eb   : > { %v874_v13 = vadd.f32 %v870_v50, %v860_v63  ;;  %v895_v54 = vadd.f32 %v890_v8, %v881_v5  ;;  %v1402_v63 = vmul.f32 %v1400_v47, %v2628_v23  ;;  %v1436_v5 = vstv %s2654_s16  ;;  %s1535_s16 = scalar_lea.sflag [#allocation5], %s2105_s14 }
 0x1ec   : > { %1315 = vrot.lane.b32.xlu1 %v1310_v9, %s1958_s6  ;;  %1327 = vrot.lane.b32.xlu0 %v1323_v10, %s1959_s19  ;;  %v1416_v10 = vmul.f32 %v1414_v58, %v2628_v23 }
 0x1ed   : > { %v882_v16 = vadd.f32 %v880_v12, %v874_v13  ;;  %v1437_v12 = vmul.f32 %v1436_v5, %v2670_v3  ;;  %v2679_v13 = vld [vmem:[#allocation2 + $0x26] sm:$0xff] }
 0x1ee   : > { %v892_v17 = vpop.permute.xlu1 %891  ;;  %v904_v18 = vpop.permute.xlu0 %903 }
 0x1ef   : > { %v896_v19 = vadd.f32 %v892_v17, %v882_v16  ;;  %v909_v20 = vadd.f32 %v904_v18, %v895_v54  ;;  %v1438_v16 = vmul.f32 %v1436_v5, %v2679_v13  ;;  %v1451_v17 = vmul.f32 %v1450_v53, %v2670_v3 }
 0x1f0   : > { %1329 = vrot.lane.b32.xlu1 %v1324_v60, %s1959_s19  ;;  %1349 = vrot.lane.b32.xlu0 %v1345_v6, %s1954_s17  ;;  %v1464_v18 = vstv %s2673_s30 }
 0x1f1   : > { %v1465_v24 = vmul.f32 %v1464_v18, %v2670_v3  ;;  %v1466_v33 = vmul.f32 %v1464_v18, %v2679_v13 }
 0x1f2   : > { %v906_v25 = vpop.permute.xlu1 %905  ;;  %v918_v27 = vpop.permute.xlu0 %917 }
 0x1f3   : > { %v910_v28 = vadd.f32 %v906_v25, %v896_v19  ;;  %v923_v30 = vadd.f32 %v918_v27, %v909_v20  ;;  %v1452_v20 = vmul.f32 %v1450_v53, %v2679_v13  ;;  %v1478_v27 = vstv %s2682_s3 }
 0x1f4   : > { %1351 = vrot.lane.b32.xlu1 %v1346_v4, %s1954_s17  ;;  %1363 = vrot.lane.b32.xlu0 %v1359_v7, %s1955_s27 }
 0x1f6   : > { %v920_v34 = vpop.permute.xlu1 %919  ;;  %v932_v35 = vpop.permute.xlu0 %931 }
 0x1f7   : > { %v924_v31 = vadd.f32 %v920_v34, %v910_v28  ;;  %v937_v38 = vadd.f32 %v932_v35, %v923_v30  ;;  %v1479_v34 = vmul.f32 %v1478_v27, %v2670_v3 }
 0x1f8   : > { %1365 = vrot.lane.b32.xlu1 %v1360_v44, %s1955_s27  ;;  %1377 = vrot.lane.b32.xlu0 %v1373_v11, %s1956_s28  ;;  %v1492_v11 = vstv %s2689_s5 }
 0x1fa   : > { %v934_v40 = vpop.permute.xlu1 %933  ;;  %v946_v41 = vpop.permute.xlu0 %945 }
 0x1fb   : > { %v938_v45 = vadd.f32 %v934_v40, %v924_v31  ;;  %v951_v51 = vadd.f32 %v946_v41, %v937_v38  ;;  %v1062_v31 = vstv %s2693_s8 }
 0x1fc   : > { %1379 = vrot.lane.b32.xlu1 %v1374_v22, %s1956_s28  ;;  %1391 = vrot.lane.b32.xlu0 %v1387_v49, %s1957_s4  ;;  %v1480_v22 = vmul.f32 %v1478_v27, %v2679_v13  ;;  %v1493_v49 = vmul.f32 %v1492_v11, %v2670_v3  ;;  %v1063_v47 = vmul.f32 %v1062_v31, %v2466_v37 }
 0x1fd   : > { %v1064_v58 = vmul.f32 %v1062_v31, %v2475_v42 }
 0x1fe   : > { %v948_v52 = vpop.permute.xlu1 %947  ;;  %v960_v2 = vpop.permute.xlu0 %959 }
 0x1ff   : > { %v965_v57 = vadd.f32 %v960_v2, %v951_v51  ;;  %v952_v59 = vadd.f32 %v948_v52, %v938_v45  ;;  %v1506_v51 = vstv %s2698_s24 }
 0x200   : > { %1393 = vrot.lane.b32.xlu1 %v1388_v26, %s1957_s4  ;;  %1405 = vrot.lane.b32.xlu0 %v1401_v55, %s1958_s6 }
 0x201   : > { %v973_v46 = vadd.f32 %v971_v56, %v965_v57  ;;  %v1494_v56 = vmul.f32 %v1492_v11, %v2679_v13  ;;  %v1507_v57 = vmul.f32 %v1506_v51, %v2670_v3 }
 0x202   : > { %v962_v61 = vpop.permute.xlu1 %961  ;;  %v982_v62 = vpop.permute.xlu0 %981 }
 0x203   : > { %v966_v43 = vadd.f32 %v962_v61, %v952_v59  ;;  %v987_v60 = vadd.f32 %v982_v62, %v973_v46  ;;  %v1508_v62 = vmul.f32 %v1506_v51, %v2679_v13 }
 0x204   : > { %1407 = vrot.lane.b32.xlu1 %v1402_v63, %s1958_s6  ;;  %1419 = vrot.lane.b32.xlu0 %v1415_v0, %s1959_s19 }
 0x205   : > { %v974_v50 = vadd.f32 %v972_v1, %v966_v43 }
 0x206   : > { %v984_v8 = vpop.permute.xlu1 %983  ;;  %v996_v9 = vpop.permute.xlu0 %995 }
 0x207   : > { %v1001_v25 = vadd.f32 %v996_v9, %v987_v60  ;;  %v988_v4 = vadd.f32 %v984_v8, %v974_v50 }
 0x208   : > { %1421 = vrot.lane.b32.xlu1 %v1416_v10, %s1959_s19  ;;  %1441 = vrot.lane.b32.xlu0 %v1437_v12, %s1954_s17 }
 0x20a   : > { %v998_v54 = vpop.permute.xlu1 %997  ;;  %v1010_v15 = vpop.permute.xlu0 %1009 }
 0x20b   : > { %v1015_v7 = vadd.f32 %v1010_v15, %v1001_v25  ;;  %v1002_v35 = vadd.f32 %v998_v54, %v988_v4 }
 0x20c   : > { %1443 = vrot.lane.b32.xlu1 %v1438_v16, %s1954_s17  ;;  %1455 = vrot.lane.b32.xlu0 %v1451_v17, %s1955_s27  ;;  %s1719_s17 = sld [smem:[#allocation7 + $0x46]] }
 0x20e   : > { %v1012_v6 = vpop.permute.xlu1 %1011  ;;  %v1024_v19 = vpop.permute.xlu0 %1023 }
 0x20f   : > { %v1029_v44 = vadd.f32 %v1024_v19, %v1015_v7  ;;  %v1016_v38 = vadd.f32 %v1012_v6, %v1002_v35 }
 0x210   : > { %1457 = vrot.lane.b32.xlu1 %v1452_v20, %s1955_s27  ;;  %1469 = vrot.lane.b32.xlu0 %v1465_v24, %s1956_s28  ;;  %s1726_s27 = sld [smem:[#allocation7 + $0x4d]] }
 0x212   : > { %v1026_v28 = vpop.permute.xlu1 %1025  ;;  %v1038_v30 = vpop.permute.xlu0 %1037  ;;  %v1154_v54 = vstv %s1719_s17 }
 0x213   : > { %v1043_v39 = vadd.f32 %v1038_v30, %v1029_v44  ;;  %v1030_v45 = vadd.f32 %v1026_v28, %v1016_v38  ;;  %v1155_v19 = vmul.f32 %v1154_v54, %v2517_v29  ;;  %v1156_v7 = vmul.f32 %v1154_v54, %v2526_v36 }
 0x214   : > { %1471 = vrot.lane.b32.xlu1 %v1466_v33, %s1956_s28  ;;  %1483 = vrot.lane.b32.xlu0 %v1479_v34, %s1957_s4  ;;  %s1733_s28 = sld [smem:[#allocation7 + $0x54]] }
 0x216   : > { %v1040_v40 = vpop.permute.xlu1 %1039  ;;  %v1052_v41 = vpop.permute.xlu0 %1051 }
 0x217   : > { %v1057_v48 = vadd.f32 %v1052_v41, %v1043_v39  ;;  %v1044_v52 = vadd.f32 %v1040_v40, %v1030_v45  ;;  %v1246_v45 = vstv %s1726_s27 }
 0x218   : > { %1485 = vrot.lane.b32.xlu1 %v1480_v22, %s1957_s4  ;;  %1497 = vrot.lane.b32.xlu0 %v1493_v49, %s1958_s6  ;;  %s1740_s4 = sld [smem:[#allocation7 + $0x5b]] }
 0x219   : > { %v1065_v2 = vadd.f32 %v1063_v47, %v1057_v48 }
 0x21a   : > { %v1054_v26 = vpop.permute.xlu1 %1053  ;;  %v1074_v55 = vpop.permute.xlu0 %1073 }
 0x21b   : > { %v1058_v59 = vadd.f32 %v1054_v26, %v1044_v52  ;;  %v1079_v1 = vadd.f32 %v1074_v55, %v1065_v2  ;;  %v1247_v26 = vmul.f32 %v1246_v45, %v2568_v21 }
 0x21c   : > { %1499 = vrot.lane.b32.xlu1 %v1494_v56, %s1958_s6  ;;  %1511 = vrot.lane.b32.xlu0 %v1507_v57, %s1959_s19  ;;  %s1643_s6 = sshll.u32 %s2105_s14, 4 }
 0x21d   : > { %v1066_v37 = vadd.f32 %v1064_v58, %v1058_v59  ;;  %s175_s25 = scalar_lea.vmem [#allocation8], %s1643_s6 }
 0x21e   : > { %v1076_v46 = vpop.permute.xlu1 %1075  ;;  %v1088_v61 = vpop.permute.xlu0 %1087  ;;  %s1548_s20 = sshll.u32 %s175_s25, 4  ;;  %s2736_s20 = int_to_ptr.vmem [resolvable:$true] %s1548_s20 }
 0x21f   : > { %v1093_v50 = vadd.f32 %v1088_v61, %v1079_v1  ;;  %v1080_v42 = vadd.f32 %v1076_v46, %v1066_v37  ;;  %v1248_v37 = vmul.f32 %v1246_v45, %v2577_v32  ;;  %s1876_s26 = scalar_lea.vmem %s2736_s20, 256 }
 0x220   : > { %1513 = vrot.lane.b32.xlu1 %v1508_v62, %s1959_s19  ;;  %s1753_s19 = sshll.u32 %s1999_s13, 8  ;;  %p1877_p13 = scmp.ne.s32.totalorder %s2736_s20, %s1876_s26 }
 0x221   : > { %s2734_s7 = scalar_lea.hbm %s2782_s2, %s1753_s19  ;;  %s1960_s13 = smov [#allocation8]  }
 0x222   : > { %v1090_v63 = vpop.permute.xlu1 %1089  ;;  %v1102_v0 = vpop.permute.xlu0 %1101  ;;  %p1878_p8 = pnand %p1877_p13, %p2796_p12  ;;  %s1880_s30 = sshll.u32 %s1960_s13, 4  ;;  %s1881_s30 = int_to_ptr.vmem [resolvable:$false] %s1880_s30 }
 0x223   : > { %v1107_v8 = vadd.f32 %v1102_v0, %v1093_v50  ;;  %v1094_v12 = vadd.f32 %v1090_v63, %v1080_v42  ;;  %s1882_s3 = scalar_lea.vmem %s1881_s30, 512  ;;  %p1883_p10 = scmp.lt.s32.totalorder %s2736_s20, %s1881_s30 }
 0x224   : > { %p1879_p9 = pneg %p1878_p8  ;;  %p1884_p1 = scmp.lt.s32.totalorder %s1882_s3, %s1876_s26 }
 0x226   : > { %v1104_v43 = vpop.permute.xlu1 %1103  ;;  %v1116_v5 = vpop.permute.xlu0 %1115  ;;  %p1885_p4 = por %p1884_p1, %p1883_p10 }
 0x227   : > { %v1121_v53 = vadd.f32 %v1116_v5, %v1107_v8  ;;  %v1108_v15 = vadd.f32 %v1104_v43, %v1094_v12 }
 0x228   : > { %p1886_p11 = pnand %p1885_p4, %p1879_p9 }
 0x22a   : > { %v1118_v9 = vpop.permute.xlu1 %1117  ;;  %v1130_v10 = vpop.permute.xlu0 %1129 }
 0x22b   : > { %v1135_v16 = vadd.f32 %v1130_v10, %v1121_v53  ;;  %v1122_v60 = vadd.f32 %v1118_v9, %v1108_v15  ;;  %v1338_v53 = vstv %s1733_s28 }
 0x22e   : > { %v1132_v17 = vpop.permute.xlu1 %1131  ;;  %v1144_v18 = vpop.permute.xlu0 %1143 }
 0x22f   : > { %v1149_v6 = vadd.f32 %v1144_v18, %v1135_v16  ;;  %v1136_v20 = vadd.f32 %v1132_v17, %v1122_v60  ;;  %v1339_v60 = vmul.f32 %v1338_v53, %v2619_v14 }
 0x231   : > { %v1157_v24 = vadd.f32 %v1155_v19, %v1149_v6 }
 0x232   : > { %v1146_v25 = vpop.permute.xlu1 %1145  ;;  %v1166_v27 = vpop.permute.xlu0 %1165 }
 0x233   : > { %v1150_v4 = vadd.f32 %v1146_v25, %v1136_v20  ;;  %v1171_v44 = vadd.f32 %v1166_v27, %v1157_v24  ;;  %v1340_v27 = vmul.f32 %v1338_v53, %v2628_v23 }
 0x235   : > { %v1158_v28 = vadd.f32 %v1156_v7, %v1150_v4 }
 0x236   : > { %v1168_v30 = vpop.permute.xlu1 %1167  ;;  %v1180_v33 = vpop.permute.xlu0 %1179 }
 0x237   : > { %v1185_v38 = vadd.f32 %v1180_v33, %v1171_v44  ;;  %v1172_v39 = vadd.f32 %v1168_v30, %v1158_v28 }
 0x23a   : > { %v1182_v34 = vpop.permute.xlu1 %1181  ;;  %v1194_v35 = vpop.permute.xlu0 %1193 }
 0x23b   : > { %v1199_v40 = vadd.f32 %v1194_v35, %v1185_v38  ;;  %v1186_v22 = vadd.f32 %v1182_v34, %v1172_v39 }
 0x23e   : > { %v1196_v11 = vpop.permute.xlu1 %1195  ;;  %v1208_v31 = vpop.permute.xlu0 %1207 }
 0x23f   : > { %v1213_v49 = vadd.f32 %v1208_v31, %v1199_v40  ;;  %v1200_v47 = vadd.f32 %v1196_v11, %v1186_v22 }
 0x242   : > { %v1210_v29 = vpop.permute.xlu1 %1209  ;;  %v1222_v41 = vpop.permute.xlu0 %1221 }
 0x243   : > { %v1227_v48 = vadd.f32 %v1222_v41, %v1213_v49  ;;  %v1214_v52 = vadd.f32 %v1210_v29, %v1200_v47  ;;  %v1430_v41 = vstv %s1740_s4 }
 0x246   : > { %v1224_v36 = vpop.permute.xlu1 %1223  ;;  %v1236_v51 = vpop.permute.xlu0 %1235 }
 0x247   : > { %v1241_v2 = vadd.f32 %v1236_v51, %v1227_v48  ;;  %v1228_v55 = vadd.f32 %v1224_v36, %v1214_v52  ;;  %v1431_v36 = vmul.f32 %v1430_v41, %v2670_v3 }
 0x249   : > { %v1249_v56 = vadd.f32 %v1247_v26, %v1241_v2 }
 0x24a   : > { %v1238_v57 = vpop.permute.xlu1 %1237  ;;  %v1258_v58 = vpop.permute.xlu0 %1257 }
 0x24b   : > { %v1242_v59 = vadd.f32 %v1238_v57, %v1228_v55  ;;  %v1263_v1 = vadd.f32 %v1258_v58, %v1249_v56  ;;  %v1432_v56 = vmul.f32 %v1430_v41, %v2679_v13 }
 0x24d   : > { %v1250_v46 = vadd.f32 %v1248_v37, %v1242_v59 }
 0x24e   : > { %v1260_v61 = vpop.permute.xlu1 %1259  ;;  %v1272_v62 = vpop.permute.xlu0 %1271 }
 0x24f   : > { %v1277_v50 = vadd.f32 %v1272_v62, %v1263_v1  ;;  %v1264_v42 = vadd.f32 %v1260_v61, %v1250_v46 }
 0x252   : > { %v1274_v63 = vpop.permute.xlu1 %1273  ;;  %v1286_v0 = vpop.permute.xlu0 %1285 }
 0x253   : > { %v1291_v8 = vadd.f32 %v1286_v0, %v1277_v50  ;;  %v1278_v10 = vadd.f32 %v1274_v63, %v1264_v42 }
 0x256   : > { %v1288_v43 = vpop.permute.xlu1 %1287  ;;  %v1300_v5 = vpop.permute.xlu0 %1299 }
 0x257   : > { %v1305_v12 = vadd.f32 %v1300_v5, %v1291_v8  ;;  %v1292_v54 = vadd.f32 %v1288_v43, %v1278_v10 }
 0x25a   : > { %v1302_v21 = vpop.permute.xlu1 %1301  ;;  %v1314_v9 = vpop.permute.xlu0 %1313 }
 0x25b   : > { %v1319_v15 = vadd.f32 %v1314_v9, %v1305_v12  ;;  %v1306_v17 = vadd.f32 %v1302_v21, %v1292_v54 }
 0x25e   : > { %v1316_v32 = vpop.permute.xlu1 %1315  ;;  %v1328_v16 = vpop.permute.xlu0 %1327 }
 0x25f   : > { %v1333_v18 = vadd.f32 %v1328_v16, %v1319_v15  ;;  %v1320_v6 = vadd.f32 %v1316_v32, %v1306_v17 }
 0x261   : > { %v1341_v19 = vadd.f32 %v1339_v60, %v1333_v18 }
 0x262   : > { %v1330_v20 = vpop.permute.xlu1 %1329  ;;  %v1350_v24 = vpop.permute.xlu0 %1349 }
 0x263   : > { %v1334_v25 = vadd.f32 %v1330_v20, %v1320_v6  ;;  %v1355_v34 = vadd.f32 %v1350_v24, %v1341_v19 }
 0x265   : > { %v1342_v4 = vadd.f32 %v1340_v27, %v1334_v25 }
 0x266   : > { %v1352_v7 = vpop.permute.xlu1 %1351  ;;  %v1364_v28 = vpop.permute.xlu0 %1363 }
 0x267   : > { %v1369_v11 = vadd.f32 %v1364_v28, %v1355_v34  ;;  %v1356_v31 = vadd.f32 %v1352_v7, %v1342_v4 }
 0x26a   : > { %v1366_v30 = vpop.permute.xlu1 %1365  ;;  %v1378_v33 = vpop.permute.xlu0 %1377 }
 0x26b   : > { %v1383_v38 = vadd.f32 %v1378_v33, %v1369_v11  ;;  %v1370_v40 = vadd.f32 %v1366_v30, %v1356_v31 }
 0x26e   : > { %v1380_v35 = vpop.permute.xlu1 %1379  ;;  %v1392_v44 = vpop.permute.xlu0 %1391 }
 0x26f   : > { %v1397_v29 = vadd.f32 %v1392_v44, %v1383_v38  ;;  %v1384_v22 = vadd.f32 %v1380_v35, %v1370_v40 }
 0x272   : > { %v1394_v14 = vpop.permute.xlu1 %1393  ;;  %v1406_v39 = vpop.permute.xlu0 %1405 }
 0x273   : > { %v1411_v49 = vadd.f32 %v1406_v39, %v1397_v29  ;;  %v1398_v47 = vadd.f32 %v1394_v14, %v1384_v22 }
 0x276   : > { %v1408_v23 = vpop.permute.xlu1 %1407  ;;  %v1420_v45 = vpop.permute.xlu0 %1419 }
 0x277   : > { %v1425_v48 = vadd.f32 %v1420_v45, %v1411_v49  ;;  %v1412_v51 = vadd.f32 %v1408_v23, %v1398_v47 }
 0x279   : > { %v1433_v52 = vadd.f32 %v1431_v36, %v1425_v48 }
 0x27a   : > { %v1422_v2 = vpop.permute.xlu1 %1421  ;;  %v1442_v26 = vpop.permute.xlu0 %1441 }
 0x27b   : > { %v1426_v55 = vadd.f32 %v1422_v2, %v1412_v51  ;;  %v1447_v61 = vadd.f32 %v1442_v26, %v1433_v52 }
 0x27d   : > { %v1434_v57 = vadd.f32 %v1432_v56, %v1426_v55 }
 0x27e   : > { %v1444_v58 = vpop.permute.xlu1 %1443  ;;  %v1456_v59 = vpop.permute.xlu0 %1455 }
 0x27f   : > { %v1461_v0 = vadd.f32 %v1456_v59, %v1447_v61  ;;  %v1448_v1 = vadd.f32 %v1444_v58, %v1434_v57 }
 0x282   : > { %v1458_v37 = vpop.permute.xlu1 %1457  ;;  %v1470_v46 = vpop.permute.xlu0 %1469 }
 0x283   : > { %v1475_v43 = vadd.f32 %v1470_v46, %v1461_v0  ;;  %v1462_v50 = vadd.f32 %v1458_v37, %v1448_v1 }
 0x286   : > { %v1472_v62 = vpop.permute.xlu1 %1471  ;;  %v1484_v63 = vpop.permute.xlu0 %1483 }
 0x287   : > { %v1489_v42 = vadd.f32 %v1484_v63, %v1475_v43  ;;  %v1476_v8 = vadd.f32 %v1472_v62, %v1462_v50 }
 0x28a   : > { %v1486_v5 = vpop.permute.xlu1 %1485  ;;  %v1498_v3 = vpop.permute.xlu0 %1497 }
 0x28b   : > { %v1503_v21 = vadd.f32 %v1498_v3, %v1489_v42  ;;  %v1490_v13 = vadd.f32 %v1486_v5, %v1476_v8 }
 0x28e   : > { %v1500_v9 = vpop.permute.xlu1 %1499  ;;  %v1512_v10 = vpop.permute.xlu0 %1511 }
 0x28f   : > { %v1517_v12 = vadd.f32 %v1512_v10, %v1503_v21  ;;  %v1504_v53 = vadd.f32 %v1500_v9, %v1490_v13 }
 0x291   : > { %v1519_v54 = vsub.f32 0.0, %v1517_v12 }
 0x292   : > { %v1514_v15 = vpop.permute.xlu1 %1513 }
 0x293   : > { %v1521_v32 = vmul.f32 1.442695, %v1519_v54  ;;  %v1518_v16 = vadd.f32 %v1514_v15, %v1504_v53 }
 0x295   : > { %1823 = vpow2.f32 %v1521_v32  ;;  %v1520_v17 = vsub.f32 0.0, %v1518_v16 }
 0x297   : > { %v1523_v18 = vmul.f32 1.442695, %v1520_v17 }
 0x299   : > { %1825 = vpow2.f32 %v1523_v18 }
 0x29f   : > { %v1824_v60 = vpop.eup %1823 }
 0x2a0   : > { %v1525_v6 = vadd.f32 1.0, %v1824_v60 }
 0x2a2   : > { %1827 = vrcp.f32 %v1525_v6 }
 0x2a3   : > { %v1826_v19 = vpop.eup %1825 }
 0x2a4   : > { %v1526_v20 = vadd.f32 1.0, %v1826_v19 }
 0x2a6   : > { %1829 = vrcp.f32 %v1526_v20 }
 0x2ac   : > { %v1828_v24 = vpop.eup %1827 }
 0x2ad   : > { %1532 = vst.msk [vmem:[%s175_s25] sm:$0xff] %vm1531_vm3, %v1828_v24 }
 0x2b0   : > { %v1830_v25 = vpop.eup %1829 }
 0x2b1   : > { %1533 = vst.msk [vmem:[%s175_s25 + $0x8] sm:$0xff] %vm1531_vm3, %v1830_v25 }
 0x2b2   : > { %1889 = shalt.err (!%p1886_p11)
}
 0x2b3   : > { %s1890_s5 = scalar_lea.hbm %s2734_s7, 256  ;;  %s1894_s17 = scalar_lea.hbm %s2782_s2, 512 }
 0x2b4   : > { %p1891_p0 = scmp.ne.s32.totalorder %s2734_s7, %s1890_s5  ;;  %p1895_p6 = scmp.lt.u32.totalorder %s2734_s7, %s2782_s2 }
 0x2b5   : > { %p1896_p5 = scmp.lt.u32.totalorder %s1894_s17, %s1890_s5  ;;  %p1898_p13 = scmp.lt.u32.totalorder %s1890_s5, %s2734_s7 }
 0x2b6   : > { %p1892_p2 = pnand %p1891_p0, %p2796_p12 }
 0x2b7   : > { %p1897_p3 = por %p1896_p5, %p1895_p6 }
 0x2b8   : > { %p1893_p7 = pneg %p1892_p2 }
 0x2b9   : > { %p1899_p8 = por %p1898_p13, %p1897_p3 }
 0x2bb   : > { %p1900_p9 = pnand %p1899_p8, %p1893_p7 }
 0x2bd   : > { %1903 = shalt.err (!%p1900_p9)
}
 0x2be   : > { %s1961_s4 = smov 128   ;;  %s1962_s6 = smov 8  }
 0x2bf   : > { %1760 = dma.vmem_to_hbm [thread:$0]  (%p2796_p12), %s2736_s20, 256, %s2734_s7, %s1535_s16, %s1961_s4, %s1961_s4, %s1962_s6  }
 0x2c0 PF: > { %s1563_s19 = sand.u32 1, %s1934_s9   ;;  %p2797_p10 = scmp.ne.s32.totalorder %s2789_s22, 0 }
 0x2c1   : > { %p2798_p1 = scmp.ge.s32.totalorder %s1946_s12, 2  ;;  %s1564_s25 = scalar_lea.sflag [#allocation5], %s1563_s19 }
 0x2c3   : > { %p1771_p4 = pnand %p2798_p1, %p2797_p10 }
 0x2c5   : > { %1929 = dma.done.wait (!%p1771_p4), %s1564_s25, 256  }
 0x2c6   : > { %1931 = vsyncadd (!%p1771_p4), %s1564_s25, 4294967040  ;;  %p16_p11 = scmp.ge.s32.totalorder %s2003_s15, 4   ;;  %s2799_s9 = smov %s1938_s10 }
 0x2c7   : > { %s2800_s10 = smov %s1942_s11  ;;  %s2801_s11 = smov %s2015_s18 }
 0x2c8   : > { %s2802_s12 = smov %s2003_s15  ;;  %18 = sbr.rel (!%p16_p11) target bundleno = 6 (0x6), region = 82 }
 0x2cf   :  { %1569 = vsyncpa [#allocation4], 1 }
 0x2d0   :  { %1571 = vsyncpa [#allocation4 + $0x1], 1 }
 0x2d1   :  { %1572 = vsyncpa [#allocation5], 1 }
 0x2d2   :  { %1574 = vsyncpa [#allocation5 + $0x1], 1 }
 0x2d3   :  { %1575 = vsyncpa [#allocation6], 1 }
 0x2d4   :  { %1577 = vsyncpa [#allocation6 + $0x1], 1 }

</bundles_post_ra>
